<compile_context>
chip_gen: v7x
topology: tpu7x:2x2x1
jax: 0.10.0
libtpu: 0.0.40
codegen_flags: <defaults>
</compile_context>

<pallas_src>
import math

import jax
import jax.numpy as jnp
from jax import lax
from jax.experimental import pallas as pl
from jax.experimental.pallas import tpu as pltpu


# ----------------------------------------------------------------------------
# Fused kernel: QKV proj + RoPE + causal GQA attention + output proj
# ----------------------------------------------------------------------------
def _make_fused_kernel(B, T, n_head, n_query_groups, head_size,
                       scale, softcap, use_rope, causal):
    rep = n_head // n_query_groups
    half = head_size // 2
    q_width = n_head * head_size
    kv_width = n_query_groups * head_size

    def kernel(x_ref, wqkv_ref, bqkv_ref, wproj_ref, bproj_ref,
               cos_ref, sin_ref, o_ref):
        # ---- fused QKV projection (single MXU matmul, f32 accumulate) ----
        x = x_ref[...]                                       # (B*T, C)
        qkv = jnp.dot(x, wqkv_ref[...],
                      preferred_element_type=jnp.float32) + bqkv_ref[...]

        w_proj = wproj_ref[...]                              # (H*hs, C)
        b_proj = bproj_ref[...]                              # (1, C)
        cos = cos_ref[...]                                   # (T, hs/2)
        sin = sin_ref[...]
        row = lax.broadcasted_iota(jnp.int32, (T, T), 0)
        col = lax.broadcasted_iota(jnp.int32, (T, T), 1)
        neg_big = jnp.float32(-1e30)                         # finite "-inf"

        def rope(u):
            # u: (T, hs), already in de-interleaved [evens | odds] layout
            ue, uo = u[:, :half], u[:, half:]
            return jnp.concatenate(
                [ue * cos - uo * sin, ue * sin + uo * cos], axis=-1)

        # Static loops over batch and head: everything stays in VMEM/registers,
        # one kernel invocation total (no per-step grid overhead).
        for b in range(B):
            r0 = b * T
            kv = []
            for g in range(n_query_groups):
                k_g = qkv[r0:r0 + T,
                          q_width + g * head_size:
                          q_width + (g + 1) * head_size]
                v_g = qkv[r0:r0 + T,
                          q_width + kv_width + g * head_size:
                          q_width + kv_width + (g + 1) * head_size]
                kv.append((rope(k_g) if use_rope else k_g, v_g))

            heads = []
            for h in range(n_head):
                k_g, v_g = kv[h // rep]                      # GQA group share
                q_h = qkv[r0:r0 + T, h * head_size:(h + 1) * head_size]
                if use_rope:
                    q_h = rope(q_h)
                # scores = q @ k^T * scale   (contract on head_dim)
                s = lax.dot_general(q_h, k_g, (((1,), (1,)), ((), ())),
                                    preferred_element_type=jnp.float32) * scale
                if softcap is not None:
                    s = jnp.tanh(s / softcap) * softcap
                if causal:
                    s = jnp.where(col > row, neg_big, s)
                # numerically stable softmax in f32
                s = s - jnp.max(s, axis=-1, keepdims=True)
                p = jnp.exp(s)
                p = p * pl.reciprocal(jnp.sum(p, axis=-1, keepdims=True),
                                      approx=True)
                heads.append(jnp.dot(p, v_g,
                                     preferred_element_type=jnp.float32))

            y_b = jnp.concatenate(heads, axis=-1)            # (T, H*hs)
            out_b = jnp.dot(y_b, w_proj,
                            preferred_element_type=jnp.float32) + b_proj
            o_ref[r0:r0 + T, :] = out_b.astype(o_ref.dtype)

    return kernel


# ----------------------------------------------------------------------------
# Host-side one-time parameter preparation
# ----------------------------------------------------------------------------
def _qkv_deinterleave_perm(n_head, n_query_groups, head_size):
    """Column permutation putting each Q/K head into [even dims | odd dims]."""
    half = head_size // 2

    def head_perm(base):
        return ([base + 2 * i for i in range(half)] +
                [base + 2 * i + 1 for i in range(half)])

    idx = []
    for h in range(n_head):                       # Q section
        idx += head_perm(h * head_size)
    off = n_head * head_size
    for g in range(n_query_groups):               # K section
        idx += head_perm(off + g * head_size)
    off2 = off + n_query_groups * head_size       # V section: identity
    idx += list(range(off2, off2 + n_query_groups * head_size))
    return jnp.asarray(idx, dtype=jnp.int32)


def prepare_params(params, cfg):
    """Permute QKV weight columns for de-interleaved in-kernel RoPE, 2-D biases."""
    nh, ng, hs = cfg["n_head"], cfg["n_query_groups"], cfg["head_size"]
    w_qkv, b_qkv = params["w_qkv"], params["b_qkv"]
    if cfg["use_rope"]:
        perm = _qkv_deinterleave_perm(nh, ng, hs)
        w_qkv = w_qkv[:, perm]
        b_qkv = b_qkv[perm]
    return dict(
        w_qkv=w_qkv,
        b_qkv=b_qkv.reshape(1, -1),
        w_proj=params["w_proj"],
        b_proj=params["b_proj"].reshape(1, -1),
        rope_cos=params["rope_cos"],
        rope_sin=params["rope_sin"],
    )


# ----------------------------------------------------------------------------
# RoPE tables (same math as pre_compute_freq, stored as cos/sin)
# ----------------------------------------------------------------------------
def precompute_rope(head_dim, context_length, base=10000.0):
    idx = jnp.arange(head_dim // 2, dtype=jnp.float32)
    inv_freq = 1.0 / (base ** (2.0 * idx / head_dim))
    pos = jnp.arange(context_length, dtype=jnp.float32)
    freq = jnp.outer(pos, inv_freq)                 # (ctx, head_dim//2)
    return jnp.cos(freq), jnp.sin(freq)


# ----------------------------------------------------------------------------
# Forward pass (matches CausalSelfAttention.forward with use_cache=False)
# ----------------------------------------------------------------------------
def causal_self_attention(x, prepped, cfg):
    B, T, C = x.shape
    nh, ng, hs = cfg["n_head"], cfg["n_query_groups"], cfg["head_size"]
    scale = 1.0 / math.sqrt(hs)

    kernel = _make_fused_kernel(
        B, T, nh, ng, hs, scale,
        cfg["attention_logit_softcapping"],
        cfg["use_rope"],
        cfg["causal_attention"],
    )

    x2 = x.reshape(B * T, C)                        # free relayout
    cos = prepped["rope_cos"][:T]
    sin = prepped["rope_sin"][:T]

    vspec = pl.BlockSpec(memory_space=pltpu.MemorySpace.VMEM)
    out = pl.pallas_call(
        kernel,
        out_shape=jax.ShapeDtypeStruct((B * T, C), x.dtype),
        in_specs=[vspec] * 7,
        out_specs=vspec,
    )(x2, prepped["w_qkv"], prepped["b_qkv"],
      prepped["w_proj"], prepped["b_proj"], cos, sin)
    return out.reshape(B, T, C)


# ----------------------------------------------------------------------------
# Pure-JAX reference (original interleaved RoPE + unpermuted weights)
# ----------------------------------------------------------------------------
def _apply_rope_interleaved(x, cos, sin):
    """x: (B, H, T, hs); cos/sin: (ctx, hs//2). Interleaved-pair rotation."""
    T = x.shape[2]
    c = cos[:T][None, None].astype(jnp.float32)
    s = sin[:T][None, None].astype(jnp.float32)
    xf = x.astype(jnp.float32)
    xe = xf[..., 0::2]
    xo = xf[..., 1::2]
    oe = xe * c - xo * s
    oo = xe * s + xo * c
    return jnp.stack([oe, oo], axis=-1).reshape(x.shape).astype(x.dtype)


def reference(x, params, cfg):
    B, T, C = x.shape
    nh, ng, hs = cfg["n_head"], cfg["n_query_groups"], cfg["head_size"]
    qkv = x.reshape(B * T, C) @ params["w_qkv"] + params["b_qkv"]
    q_size, k_size = nh * hs, ng * hs
    q = qkv[:, :q_size].reshape(B, T, nh, hs).transpose(0, 2, 1, 3)
    k = qkv[:, q_size:q_size + k_size].reshape(B, T, ng, hs).transpose(0, 2, 1, 3)
    v = qkv[:, q_size + k_size:].reshape(B, T, ng, hs).transpose(0, 2, 1, 3)
    if cfg["use_rope"]:
        q = _apply_rope_interleaved(q, params["rope_cos"], params["rope_sin"])
        k = _apply_rope_interleaved(k, params["rope_cos"], params["rope_sin"])
    rep = nh // ng
    k = jnp.repeat(k, rep, axis=1)
    v = jnp.repeat(v, rep, axis=1)
    scale = 1.0 / math.sqrt(hs)
    s = jnp.einsum("bhtd,bhsd->bhts", q, k).astype(jnp.float32) * scale
    cap = cfg["attention_logit_softcapping"]
    if cap is not None:
        s = jnp.tanh(s / cap) * cap
    if cfg["causal_attention"]:
        row = jnp.arange(T)[:, None]
        col = jnp.arange(T)[None, :]
        s = jnp.where(col > row, -jnp.inf, s)
    p = jax.nn.softmax(s, axis=-1).astype(q.dtype)
    y = jnp.einsum("bhts,bhsd->bhtd", p, v)
    y = y.transpose(0, 2, 1, 3).reshape(B * T, nh * hs)
    return (y @ params["w_proj"] + params["b_proj"]).reshape(B, T, C)


# ----------------------------------------------------------------------------
if __name__ == "__main__":
    cfg = dict(
        n_embd=32,
        n_head=4,
        n_query_groups=2,
        head_size=8,          # n_embd // n_head
        block_size=16,
        use_rope=True,
        causal_attention=True,
        attention_logit_softcapping=None,
    )
    B, T, C = 2, 8, cfg["n_embd"]
    nh, ng, hs = cfg["n_head"], cfg["n_query_groups"], cfg["head_size"]
    qkv_out = (nh + 2 * ng) * hs   # (n_head + 2*n_query_groups) * head_size

    key = jax.random.PRNGKey(0)
    k1, k2, k3, k4, k5 = jax.random.split(key, 5)
    cos, sin = precompute_rope(hs, cfg["block_size"])
    params = dict(
        w_qkv=(0.02 * jax.random.normal(k1, (C, qkv_out), jnp.float32)),
        b_qkv=(0.02 * jax.random.normal(k2, (qkv_out,), jnp.float32)),
        w_proj=(0.02 * jax.random.normal(k3, (nh * hs, C), jnp.float32)),
        b_proj=(0.02 * jax.random.normal(k4, (C,), jnp.float32)),
        rope_cos=cos,
        rope_sin=sin,
    )
    x = jax.random.normal(k5, (B, T, C), jnp.float32)

    # one-time weight permutation for the in-kernel de-interleaved RoPE layout
    prepped = prepare_params(params, cfg)

    attn_fn = jax.jit(lambda xx, pp: causal_self_attention(xx, pp, cfg))
    out = jax.block_until_ready(attn_fn(x, prepped))

    ref = jax.block_until_ready(reference(x, params, cfg))
    assert out.shape == (B, T, C), out.shape
    assert jnp.allclose(out, ref, atol=2e-4, rtol=1e-3), (
        float(jnp.max(jnp.abs(out - ref)))
    )
    print("KERNEL_OK")
</pallas_src>

<mosaic_0001>
module attributes {stable_mosaic.version = 11 : i64} {
  func.func @kernel(%arg0: memref<16x32xf32, #tpu.memory_space<vmem>>, %arg1: memref<32x64xf32, #tpu.memory_space<vmem>>, %arg2: memref<1x64xf32, #tpu.memory_space<vmem>>, %arg3: memref<32x32xf32, #tpu.memory_space<vmem>>, %arg4: memref<1x32xf32, #tpu.memory_space<vmem>>, %arg5: memref<8x4xf32, #tpu.memory_space<vmem>>, %arg6: memref<8x4xf32, #tpu.memory_space<vmem>>, %arg7: memref<16x32xf32, #tpu.memory_space<vmem>>) attributes {dimension_semantics = [], scalar_prefetch = 0 : i64, scratch_operands = 0 : i64, tpu.core_type = #tpu.core_type<tc>} {
    %c0 = arith.constant 0 : index
    %c0_0 = arith.constant 0 : index
    %0 = vector.load %arg0[%c0, %c0_0] : memref<16x32xf32, #tpu.memory_space<vmem>>, vector<16x32xf32>
    %c0_1 = arith.constant 0 : index
    %c0_2 = arith.constant 0 : index
    %1 = vector.load %arg1[%c0_1, %c0_2] : memref<32x64xf32, #tpu.memory_space<vmem>>, vector<32x64xf32>
    %cst = arith.constant dense<0.000000e+00> : vector<16x64xf32>
    %2 = tpu.matmul %0, %1, %cst {dimension_numbers = #tpu.dot_dimension_numbers<[1], [0], [0], [1], [0, 0, 1, 1], [], []>} : vector<16x32xf32>, vector<32x64xf32>, vector<16x64xf32> -> vector<16x64xf32>
    %c0_3 = arith.constant 0 : index
    %c0_4 = arith.constant 0 : index
    %3 = vector.load %arg2[%c0_3, %c0_4] : memref<1x64xf32, #tpu.memory_space<vmem>>, vector<1x64xf32>
    %4 = vector.broadcast %3 : vector<1x64xf32> to vector<16x64xf32>
    %5 = arith.addf %2, %4 : vector<16x64xf32>
    %c0_5 = arith.constant 0 : index
    %c0_6 = arith.constant 0 : index
    %6 = vector.load %arg3[%c0_5, %c0_6] : memref<32x32xf32, #tpu.memory_space<vmem>>, vector<32x32xf32>
    %c0_7 = arith.constant 0 : index
    %c0_8 = arith.constant 0 : index
    %7 = vector.load %arg4[%c0_7, %c0_8] : memref<1x32xf32, #tpu.memory_space<vmem>>, vector<1x32xf32>
    %c0_9 = arith.constant 0 : index
    %c0_10 = arith.constant 0 : index
    %8 = vector.load %arg5[%c0_9, %c0_10] : memref<8x4xf32, #tpu.memory_space<vmem>>, vector<8x4xf32>
    %c0_11 = arith.constant 0 : index
    %c0_12 = arith.constant 0 : index
    %9 = vector.load %arg6[%c0_11, %c0_12] : memref<8x4xf32, #tpu.memory_space<vmem>>, vector<8x4xf32>
    %10 = tpu.iota {dimensions = array<i32: 0>} : vector<8x8xi32>
    %11 = tpu.iota {dimensions = array<i32: 1>} : vector<8x8xi32>
    %12 = vector.extract_strided_slice %5 {offsets = [0, 32], sizes = [8, 8], strides = [1, 1]} : vector<16x64xf32> to vector<8x8xf32>
    %13 = vector.extract_strided_slice %5 {offsets = [0, 48], sizes = [8, 8], strides = [1, 1]} : vector<16x64xf32> to vector<8x8xf32>
    %14 = vector.extract_strided_slice %12 {offsets = [0, 0], sizes = [8, 4], strides = [1, 1]} : vector<8x8xf32> to vector<8x4xf32>
    %15 = vector.extract_strided_slice %12 {offsets = [0, 4], sizes = [8, 4], strides = [1, 1]} : vector<8x8xf32> to vector<8x4xf32>
    %16 = arith.mulf %14, %8 : vector<8x4xf32>
    %17 = arith.mulf %15, %9 : vector<8x4xf32>
    %18 = arith.subf %16, %17 : vector<8x4xf32>
    %19 = arith.mulf %14, %9 : vector<8x4xf32>
    %20 = arith.mulf %15, %8 : vector<8x4xf32>
    %21 = arith.addf %19, %20 : vector<8x4xf32>
    %22 = tpu.concatenate %18, %21 in 1 : vector<8x4xf32>, vector<8x4xf32> -> vector<8x8xf32>
    %23 = vector.extract_strided_slice %5 {offsets = [0, 40], sizes = [8, 8], strides = [1, 1]} : vector<16x64xf32> to vector<8x8xf32>
    %24 = vector.extract_strided_slice %5 {offsets = [0, 56], sizes = [8, 8], strides = [1, 1]} : vector<16x64xf32> to vector<8x8xf32>
    %25 = vector.extract_strided_slice %23 {offsets = [0, 0], sizes = [8, 4], strides = [1, 1]} : vector<8x8xf32> to vector<8x4xf32>
    %26 = vector.extract_strided_slice %23 {offsets = [0, 4], sizes = [8, 4], strides = [1, 1]} : vector<8x8xf32> to vector<8x4xf32>
    %27 = arith.mulf %25, %8 : vector<8x4xf32>
    %28 = arith.mulf %26, %9 : vector<8x4xf32>
    %29 = arith.subf %27, %28 : vector<8x4xf32>
    %30 = arith.mulf %25, %9 : vector<8x4xf32>
    %31 = arith.mulf %26, %8 : vector<8x4xf32>
    %32 = arith.addf %30, %31 : vector<8x4xf32>
    %33 = tpu.concatenate %29, %32 in 1 : vector<8x4xf32>, vector<8x4xf32> -> vector<8x8xf32>
    %34 = vector.extract_strided_slice %5 {offsets = [0, 0], sizes = [8, 8], strides = [1, 1]} : vector<16x64xf32> to vector<8x8xf32>
    %35 = vector.extract_strided_slice %34 {offsets = [0, 0], sizes = [8, 4], strides = [1, 1]} : vector<8x8xf32> to vector<8x4xf32>
    %36 = vector.extract_strided_slice %34 {offsets = [0, 4], sizes = [8, 4], strides = [1, 1]} : vector<8x8xf32> to vector<8x4xf32>
    %37 = arith.mulf %35, %8 : vector<8x4xf32>
    %38 = arith.mulf %36, %9 : vector<8x4xf32>
    %39 = arith.subf %37, %38 : vector<8x4xf32>
    %40 = arith.mulf %35, %9 : vector<8x4xf32>
    %41 = arith.mulf %36, %8 : vector<8x4xf32>
    %42 = arith.addf %40, %41 : vector<8x4xf32>
    %43 = tpu.concatenate %39, %42 in 1 : vector<8x4xf32>, vector<8x4xf32> -> vector<8x8xf32>
    %cst_13 = arith.constant dense<0.000000e+00> : vector<8x8xf32>
    %44 = tpu.matmul %43, %22, %cst_13 {dimension_numbers = #tpu.dot_dimension_numbers<[1], [1], [0], [0], [0, 0, 1, 0], [], []>} : vector<8x8xf32>, vector<8x8xf32>, vector<8x8xf32> -> vector<8x8xf32>
    %cst_14 = arith.constant 0.353553385 : f32
    %45 = vector.broadcast %cst_14 : f32 to vector<8x8xf32>
    %46 = arith.mulf %44, %45 : vector<8x8xf32>
    %47 = arith.cmpi sgt, %11, %10 : vector<8x8xi32>
    %cst_15 = arith.constant -1.000000e+30 : f32
    %48 = vector.broadcast %cst_15 : f32 to vector<8x8xf32>
    %49 = arith.select %47, %48, %46 : vector<8x8xi1>, vector<8x8xf32>
    %cst_16 = arith.constant dense<0xFF800000> : vector<8xf32>
    %50 = vector.multi_reduction <maximumf>, %49, %cst_16 [1] : vector<8x8xf32> to vector<8xf32>
    %51 = vector.shape_cast %50 : vector<8xf32> to vector<8x1xf32>
    %52 = vector.broadcast %51 : vector<8x1xf32> to vector<8x8xf32>
    %53 = arith.subf %49, %52 : vector<8x8xf32>
    %54 = math.exp %53 : vector<8x8xf32>
    %cst_17 = arith.constant dense<0.000000e+00> : vector<8xf32>
    %55 = vector.multi_reduction <add>, %54, %cst_17 [1] : vector<8x8xf32> to vector<8xf32>
    %56 = vector.shape_cast %55 : vector<8xf32> to vector<8x1xf32>
    %57 = tpu.reciprocal %56 {approx = true} : vector<8x1xf32> -> vector<8x1xf32>
    %58 = vector.broadcast %57 : vector<8x1xf32> to vector<8x8xf32>
    %59 = arith.mulf %54, %58 : vector<8x8xf32>
    %cst_18 = arith.constant dense<0.000000e+00> : vector<8x8xf32>
    %60 = tpu.matmul %59, %13, %cst_18 {dimension_numbers = #tpu.dot_dimension_numbers<[1], [0], [0], [1], [0, 0, 1, 1], [], []>} : vector<8x8xf32>, vector<8x8xf32>, vector<8x8xf32> -> vector<8x8xf32>
    %61 = vector.extract_strided_slice %5 {offsets = [0, 8], sizes = [8, 8], strides = [1, 1]} : vector<16x64xf32> to vector<8x8xf32>
    %62 = vector.extract_strided_slice %61 {offsets = [0, 0], sizes = [8, 4], strides = [1, 1]} : vector<8x8xf32> to vector<8x4xf32>
    %63 = vector.extract_strided_slice %61 {offsets = [0, 4], sizes = [8, 4], strides = [1, 1]} : vector<8x8xf32> to vector<8x4xf32>
    %64 = arith.mulf %62, %8 : vector<8x4xf32>
    %65 = arith.mulf %63, %9 : vector<8x4xf32>
    %66 = arith.subf %64, %65 : vector<8x4xf32>
    %67 = arith.mulf %62, %9 : vector<8x4xf32>
    %68 = arith.mulf %63, %8 : vector<8x4xf32>
    %69 = arith.addf %67, %68 : vector<8x4xf32>
    %70 = tpu.concatenate %66, %69 in 1 : vector<8x4xf32>, vector<8x4xf32> -> vector<8x8xf32>
    %cst_19 = arith.constant dense<0.000000e+00> : vector<8x8xf32>
    %71 = tpu.matmul %70, %22, %cst_19 {dimension_numbers = #tpu.dot_dimension_numbers<[1], [1], [0], [0], [0, 0, 1, 0], [], []>} : vector<8x8xf32>, vector<8x8xf32>, vector<8x8xf32> -> vector<8x8xf32>
    %cst_20 = arith.constant 0.353553385 : f32
    %72 = vector.broadcast %cst_20 : f32 to vector<8x8xf32>
    %73 = arith.mulf %71, %72 : vector<8x8xf32>
    %74 = arith.cmpi sgt, %11, %10 : vector<8x8xi32>
    %cst_21 = arith.constant -1.000000e+30 : f32
    %75 = vector.broadcast %cst_21 : f32 to vector<8x8xf32>
    %76 = arith.select %74, %75, %73 : vector<8x8xi1>, vector<8x8xf32>
    %cst_22 = arith.constant dense<0xFF800000> : vector<8xf32>
    %77 = vector.multi_reduction <maximumf>, %76, %cst_22 [1] : vector<8x8xf32> to vector<8xf32>
    %78 = vector.shape_cast %77 : vector<8xf32> to vector<8x1xf32>
    %79 = vector.broadcast %78 : vector<8x1xf32> to vector<8x8xf32>
    %80 = arith.subf %76, %79 : vector<8x8xf32>
    %81 = math.exp %80 : vector<8x8xf32>
    %cst_23 = arith.constant dense<0.000000e+00> : vector<8xf32>
    %82 = vector.multi_reduction <add>, %81, %cst_23 [1] : vector<8x8xf32> to vector<8xf32>
    %83 = vector.shape_cast %82 : vector<8xf32> to vector<8x1xf32>
    %84 = tpu.reciprocal %83 {approx = true} : vector<8x1xf32> -> vector<8x1xf32>
    %85 = vector.broadcast %84 : vector<8x1xf32> to vector<8x8xf32>
    %86 = arith.mulf %81, %85 : vector<8x8xf32>
    %cst_24 = arith.constant dense<0.000000e+00> : vector<8x8xf32>
    %87 = tpu.matmul %86, %13, %cst_24 {dimension_numbers = #tpu.dot_dimension_numbers<[1], [0], [0], [1], [0, 0, 1, 1], [], []>} : vector<8x8xf32>, vector<8x8xf32>, vector<8x8xf32> -> vector<8x8xf32>
    %88 = vector.extract_strided_slice %5 {offsets = [0, 16], sizes = [8, 8], strides = [1, 1]} : vector<16x64xf32> to vector<8x8xf32>
    %89 = vector.extract_strided_slice %88 {offsets = [0, 0], sizes = [8, 4], strides = [1, 1]} : vector<8x8xf32> to vector<8x4xf32>
    %90 = vector.extract_strided_slice %88 {offsets = [0, 4], sizes = [8, 4], strides = [1, 1]} : vector<8x8xf32> to vector<8x4xf32>
    %91 = arith.mulf %89, %8 : vector<8x4xf32>
    %92 = arith.mulf %90, %9 : vector<8x4xf32>
    %93 = arith.subf %91, %92 : vector<8x4xf32>
    %94 = arith.mulf %89, %9 : vector<8x4xf32>
    %95 = arith.mulf %90, %8 : vector<8x4xf32>
    %96 = arith.addf %94, %95 : vector<8x4xf32>
    %97 = tpu.concatenate %93, %96 in 1 : vector<8x4xf32>, vector<8x4xf32> -> vector<8x8xf32>
    %cst_25 = arith.constant dense<0.000000e+00> : vector<8x8xf32>
    %98 = tpu.matmul %97, %33, %cst_25 {dimension_numbers = #tpu.dot_dimension_numbers<[1], [1], [0], [0], [0, 0, 1, 0], [], []>} : vector<8x8xf32>, vector<8x8xf32>, vector<8x8xf32> -> vector<8x8xf32>
    %cst_26 = arith.constant 0.353553385 : f32
    %99 = vector.broadcast %cst_26 : f32 to vector<8x8xf32>
    %100 = arith.mulf %98, %99 : vector<8x8xf32>
    %101 = arith.cmpi sgt, %11, %10 : vector<8x8xi32>
    %cst_27 = arith.constant -1.000000e+30 : f32
    %102 = vector.broadcast %cst_27 : f32 to vector<8x8xf32>
    %103 = arith.select %101, %102, %100 : vector<8x8xi1>, vector<8x8xf32>
    %cst_28 = arith.constant dense<0xFF800000> : vector<8xf32>
    %104 = vector.multi_reduction <maximumf>, %103, %cst_28 [1] : vector<8x8xf32> to vector<8xf32>
    %105 = vector.shape_cast %104 : vector<8xf32> to vector<8x1xf32>
    %106 = vector.broadcast %105 : vector<8x1xf32> to vector<8x8xf32>
    %107 = arith.subf %103, %106 : vector<8x8xf32>
    %108 = math.exp %107 : vector<8x8xf32>
    %cst_29 = arith.constant dense<0.000000e+00> : vector<8xf32>
    %109 = vector.multi_reduction <add>, %108, %cst_29 [1] : vector<8x8xf32> to vector<8xf32>
    %110 = vector.shape_cast %109 : vector<8xf32> to vector<8x1xf32>
    %111 = tpu.reciprocal %110 {approx = true} : vector<8x1xf32> -> vector<8x1xf32>
    %112 = vector.broadcast %111 : vector<8x1xf32> to vector<8x8xf32>
    %113 = arith.mulf %108, %112 : vector<8x8xf32>
    %cst_30 = arith.constant dense<0.000000e+00> : vector<8x8xf32>
    %114 = tpu.matmul %113, %24, %cst_30 {dimension_numbers = #tpu.dot_dimension_numbers<[1], [0], [0], [1], [0, 0, 1, 1], [], []>} : vector<8x8xf32>, vector<8x8xf32>, vector<8x8xf32> -> vector<8x8xf32>
    %115 = vector.extract_strided_slice %5 {offsets = [0, 24], sizes = [8, 8], strides = [1, 1]} : vector<16x64xf32> to vector<8x8xf32>
    %116 = vector.extract_strided_slice %115 {offsets = [0, 0], sizes = [8, 4], strides = [1, 1]} : vector<8x8xf32> to vector<8x4xf32>
    %117 = vector.extract_strided_slice %115 {offsets = [0, 4], sizes = [8, 4], strides = [1, 1]} : vector<8x8xf32> to vector<8x4xf32>
    %118 = arith.mulf %116, %8 : vector<8x4xf32>
    %119 = arith.mulf %117, %9 : vector<8x4xf32>
    %120 = arith.subf %118, %119 : vector<8x4xf32>
    %121 = arith.mulf %116, %9 : vector<8x4xf32>
    %122 = arith.mulf %117, %8 : vector<8x4xf32>
    %123 = arith.addf %121, %122 : vector<8x4xf32>
    %124 = tpu.concatenate %120, %123 in 1 : vector<8x4xf32>, vector<8x4xf32> -> vector<8x8xf32>
    %cst_31 = arith.constant dense<0.000000e+00> : vector<8x8xf32>
    %125 = tpu.matmul %124, %33, %cst_31 {dimension_numbers = #tpu.dot_dimension_numbers<[1], [1], [0], [0], [0, 0, 1, 0], [], []>} : vector<8x8xf32>, vector<8x8xf32>, vector<8x8xf32> -> vector<8x8xf32>
    %cst_32 = arith.constant 0.353553385 : f32
    %126 = vector.broadcast %cst_32 : f32 to vector<8x8xf32>
    %127 = arith.mulf %125, %126 : vector<8x8xf32>
    %128 = arith.cmpi sgt, %11, %10 : vector<8x8xi32>
    %cst_33 = arith.constant -1.000000e+30 : f32
    %129 = vector.broadcast %cst_33 : f32 to vector<8x8xf32>
    %130 = arith.select %128, %129, %127 : vector<8x8xi1>, vector<8x8xf32>
    %cst_34 = arith.constant dense<0xFF800000> : vector<8xf32>
    %131 = vector.multi_reduction <maximumf>, %130, %cst_34 [1] : vector<8x8xf32> to vector<8xf32>
    %132 = vector.shape_cast %131 : vector<8xf32> to vector<8x1xf32>
    %133 = vector.broadcast %132 : vector<8x1xf32> to vector<8x8xf32>
    %134 = arith.subf %130, %133 : vector<8x8xf32>
    %135 = math.exp %134 : vector<8x8xf32>
    %cst_35 = arith.constant dense<0.000000e+00> : vector<8xf32>
    %136 = vector.multi_reduction <add>, %135, %cst_35 [1] : vector<8x8xf32> to vector<8xf32>
    %137 = vector.shape_cast %136 : vector<8xf32> to vector<8x1xf32>
    %138 = tpu.reciprocal %137 {approx = true} : vector<8x1xf32> -> vector<8x1xf32>
    %139 = vector.broadcast %138 : vector<8x1xf32> to vector<8x8xf32>
    %140 = arith.mulf %135, %139 : vector<8x8xf32>
    %cst_36 = arith.constant dense<0.000000e+00> : vector<8x8xf32>
    %141 = tpu.matmul %140, %24, %cst_36 {dimension_numbers = #tpu.dot_dimension_numbers<[1], [0], [0], [1], [0, 0, 1, 1], [], []>} : vector<8x8xf32>, vector<8x8xf32>, vector<8x8xf32> -> vector<8x8xf32>
    %142 = tpu.concatenate %60, %87, %114, %141 in 1 : vector<8x8xf32>, vector<8x8xf32>, vector<8x8xf32>, vector<8x8xf32> -> vector<8x32xf32>
    %cst_37 = arith.constant dense<0.000000e+00> : vector<8x32xf32>
    %143 = tpu.matmul %142, %6, %cst_37 {dimension_numbers = #tpu.dot_dimension_numbers<[1], [0], [0], [1], [0, 0, 1, 1], [], []>} : vector<8x32xf32>, vector<32x32xf32>, vector<8x32xf32> -> vector<8x32xf32>
    %144 = vector.broadcast %7 : vector<1x32xf32> to vector<8x32xf32>
    %145 = arith.addf %143, %144 : vector<8x32xf32>
    %c0_38 = arith.constant 0 : index
    %c0_39 = arith.constant 0 : index
    %146 = vector.load %arg7[%c0_38, %c0_39] : memref<16x32xf32, #tpu.memory_space<vmem>>, vector<8x32xf32>
    tpu.vector_store %arg7[%c0_38, %c0_39], %145 {strides = array<i32>} : memref<16x32xf32, #tpu.memory_space<vmem>>, vector<8x32xf32>,
    %147 = vector.extract_strided_slice %5 {offsets = [8, 32], sizes = [8, 8], strides = [1, 1]} : vector<16x64xf32> to vector<8x8xf32>
    %148 = vector.extract_strided_slice %5 {offsets = [8, 48], sizes = [8, 8], strides = [1, 1]} : vector<16x64xf32> to vector<8x8xf32>
    %149 = vector.extract_strided_slice %147 {offsets = [0, 0], sizes = [8, 4], strides = [1, 1]} : vector<8x8xf32> to vector<8x4xf32>
    %150 = vector.extract_strided_slice %147 {offsets = [0, 4], sizes = [8, 4], strides = [1, 1]} : vector<8x8xf32> to vector<8x4xf32>
    %151 = arith.mulf %149, %8 : vector<8x4xf32>
    %152 = arith.mulf %150, %9 : vector<8x4xf32>
    %153 = arith.subf %151, %152 : vector<8x4xf32>
    %154 = arith.mulf %149, %9 : vector<8x4xf32>
    %155 = arith.mulf %150, %8 : vector<8x4xf32>
    %156 = arith.addf %154, %155 : vector<8x4xf32>
    %157 = tpu.concatenate %153, %156 in 1 : vector<8x4xf32>, vector<8x4xf32> -> vector<8x8xf32>
    %158 = vector.extract_strided_slice %5 {offsets = [8, 40], sizes = [8, 8], strides = [1, 1]} : vector<16x64xf32> to vector<8x8xf32>
    %159 = vector.extract_strided_slice %5 {offsets = [8, 56], sizes = [8, 8], strides = [1, 1]} : vector<16x64xf32> to vector<8x8xf32>
    %160 = vector.extract_strided_slice %158 {offsets = [0, 0], sizes = [8, 4], strides = [1, 1]} : vector<8x8xf32> to vector<8x4xf32>
    %161 = vector.extract_strided_slice %158 {offsets = [0, 4], sizes = [8, 4], strides = [1, 1]} : vector<8x8xf32> to vector<8x4xf32>
    %162 = arith.mulf %160, %8 : vector<8x4xf32>
    %163 = arith.mulf %161, %9 : vector<8x4xf32>
    %164 = arith.subf %162, %163 : vector<8x4xf32>
    %165 = arith.mulf %160, %9 : vector<8x4xf32>
    %166 = arith.mulf %161, %8 : vector<8x4xf32>
    %167 = arith.addf %165, %166 : vector<8x4xf32>
    %168 = tpu.concatenate %164, %167 in 1 : vector<8x4xf32>, vector<8x4xf32> -> vector<8x8xf32>
    %169 = vector.extract_strided_slice %5 {offsets = [8, 0], sizes = [8, 8], strides = [1, 1]} : vector<16x64xf32> to vector<8x8xf32>
    %170 = vector.extract_strided_slice %169 {offsets = [0, 0], sizes = [8, 4], strides = [1, 1]} : vector<8x8xf32> to vector<8x4xf32>
    %171 = vector.extract_strided_slice %169 {offsets = [0, 4], sizes = [8, 4], strides = [1, 1]} : vector<8x8xf32> to vector<8x4xf32>
    %172 = arith.mulf %170, %8 : vector<8x4xf32>
    %173 = arith.mulf %171, %9 : vector<8x4xf32>
    %174 = arith.subf %172, %173 : vector<8x4xf32>
    %175 = arith.mulf %170, %9 : vector<8x4xf32>
    %176 = arith.mulf %171, %8 : vector<8x4xf32>
    %177 = arith.addf %175, %176 : vector<8x4xf32>
    %178 = tpu.concatenate %174, %177 in 1 : vector<8x4xf32>, vector<8x4xf32> -> vector<8x8xf32>
    %cst_40 = arith.constant dense<0.000000e+00> : vector<8x8xf32>
    %179 = tpu.matmul %178, %157, %cst_40 {dimension_numbers = #tpu.dot_dimension_numbers<[1], [1], [0], [0], [0, 0, 1, 0], [], []>} : vector<8x8xf32>, vector<8x8xf32>, vector<8x8xf32> -> vector<8x8xf32>
    %cst_41 = arith.constant 0.353553385 : f32
    %180 = vector.broadcast %cst_41 : f32 to vector<8x8xf32>
    %181 = arith.mulf %179, %180 : vector<8x8xf32>
    %182 = arith.cmpi sgt, %11, %10 : vector<8x8xi32>
    %cst_42 = arith.constant -1.000000e+30 : f32
    %183 = vector.broadcast %cst_42 : f32 to vector<8x8xf32>
    %184 = arith.select %182, %183, %181 : vector<8x8xi1>, vector<8x8xf32>
    %cst_43 = arith.constant dense<0xFF800000> : vector<8xf32>
    %185 = vector.multi_reduction <maximumf>, %184, %cst_43 [1] : vector<8x8xf32> to vector<8xf32>
    %186 = vector.shape_cast %185 : vector<8xf32> to vector<8x1xf32>
    %187 = vector.broadcast %186 : vector<8x1xf32> to vector<8x8xf32>
    %188 = arith.subf %184, %187 : vector<8x8xf32>
    %189 = math.exp %188 : vector<8x8xf32>
    %cst_44 = arith.constant dense<0.000000e+00> : vector<8xf32>
    %190 = vector.multi_reduction <add>, %189, %cst_44 [1] : vector<8x8xf32> to vector<8xf32>
    %191 = vector.shape_cast %190 : vector<8xf32> to vector<8x1xf32>
    %192 = tpu.reciprocal %191 {approx = true} : vector<8x1xf32> -> vector<8x1xf32>
    %193 = vector.broadcast %192 : vector<8x1xf32> to vector<8x8xf32>
    %194 = arith.mulf %189, %193 : vector<8x8xf32>
    %cst_45 = arith.constant dense<0.000000e+00> : vector<8x8xf32>
    %195 = tpu.matmul %194, %148, %cst_45 {dimension_numbers = #tpu.dot_dimension_numbers<[1], [0], [0], [1], [0, 0, 1, 1], [], []>} : vector<8x8xf32>, vector<8x8xf32>, vector<8x8xf32> -> vector<8x8xf32>
    %196 = vector.extract_strided_slice %5 {offsets = [8, 8], sizes = [8, 8], strides = [1, 1]} : vector<16x64xf32> to vector<8x8xf32>
    %197 = vector.extract_strided_slice %196 {offsets = [0, 0], sizes = [8, 4], strides = [1, 1]} : vector<8x8xf32> to vector<8x4xf32>
    %198 = vector.extract_strided_slice %196 {offsets = [0, 4], sizes = [8, 4], strides = [1, 1]} : vector<8x8xf32> to vector<8x4xf32>
    %199 = arith.mulf %197, %8 : vector<8x4xf32>
    %200 = arith.mulf %198, %9 : vector<8x4xf32>
    %201 = arith.subf %199, %200 : vector<8x4xf32>
    %202 = arith.mulf %197, %9 : vector<8x4xf32>
    %203 = arith.mulf %198, %8 : vector<8x4xf32>
    %204 = arith.addf %202, %203 : vector<8x4xf32>
    %205 = tpu.concatenate %201, %204 in 1 : vector<8x4xf32>, vector<8x4xf32> -> vector<8x8xf32>
    %cst_46 = arith.constant dense<0.000000e+00> : vector<8x8xf32>
    %206 = tpu.matmul %205, %157, %cst_46 {dimension_numbers = #tpu.dot_dimension_numbers<[1], [1], [0], [0], [0, 0, 1, 0], [], []>} : vector<8x8xf32>, vector<8x8xf32>, vector<8x8xf32> -> vector<8x8xf32>
    %cst_47 = arith.constant 0.353553385 : f32
    %207 = vector.broadcast %cst_47 : f32 to vector<8x8xf32>
    %208 = arith.mulf %206, %207 : vector<8x8xf32>
    %209 = arith.cmpi sgt, %11, %10 : vector<8x8xi32>
    %cst_48 = arith.constant -1.000000e+30 : f32
    %210 = vector.broadcast %cst_48 : f32 to vector<8x8xf32>
    %211 = arith.select %209, %210, %208 : vector<8x8xi1>, vector<8x8xf32>
    %cst_49 = arith.constant dense<0xFF800000> : vector<8xf32>
    %212 = vector.multi_reduction <maximumf>, %211, %cst_49 [1] : vector<8x8xf32> to vector<8xf32>
    %213 = vector.shape_cast %212 : vector<8xf32> to vector<8x1xf32>
    %214 = vector.broadcast %213 : vector<8x1xf32> to vector<8x8xf32>
    %215 = arith.subf %211, %214 : vector<8x8xf32>
    %216 = math.exp %215 : vector<8x8xf32>
    %cst_50 = arith.constant dense<0.000000e+00> : vector<8xf32>
    %217 = vector.multi_reduction <add>, %216, %cst_50 [1] : vector<8x8xf32> to vector<8xf32>
    %218 = vector.shape_cast %217 : vector<8xf32> to vector<8x1xf32>
    %219 = tpu.reciprocal %218 {approx = true} : vector<8x1xf32> -> vector<8x1xf32>
    %220 = vector.broadcast %219 : vector<8x1xf32> to vector<8x8xf32>
    %221 = arith.mulf %216, %220 : vector<8x8xf32>
    %cst_51 = arith.constant dense<0.000000e+00> : vector<8x8xf32>
    %222 = tpu.matmul %221, %148, %cst_51 {dimension_numbers = #tpu.dot_dimension_numbers<[1], [0], [0], [1], [0, 0, 1, 1], [], []>} : vector<8x8xf32>, vector<8x8xf32>, vector<8x8xf32> -> vector<8x8xf32>
    %223 = vector.extract_strided_slice %5 {offsets = [8, 16], sizes = [8, 8], strides = [1, 1]} : vector<16x64xf32> to vector<8x8xf32>
    %224 = vector.extract_strided_slice %223 {offsets = [0, 0], sizes = [8, 4], strides = [1, 1]} : vector<8x8xf32> to vector<8x4xf32>
    %225 = vector.extract_strided_slice %223 {offsets = [0, 4], sizes = [8, 4], strides = [1, 1]} : vector<8x8xf32> to vector<8x4xf32>
    %226 = arith.mulf %224, %8 : vector<8x4xf32>
    %227 = arith.mulf %225, %9 : vector<8x4xf32>
    %228 = arith.subf %226, %227 : vector<8x4xf32>
    %229 = arith.mulf %224, %9 : vector<8x4xf32>
    %230 = arith.mulf %225, %8 : vector<8x4xf32>
    %231 = arith.addf %229, %230 : vector<8x4xf32>
    %232 = tpu.concatenate %228, %231 in 1 : vector<8x4xf32>, vector<8x4xf32> -> vector<8x8xf32>
    %cst_52 = arith.constant dense<0.000000e+00> : vector<8x8xf32>
    %233 = tpu.matmul %232, %168, %cst_52 {dimension_numbers = #tpu.dot_dimension_numbers<[1], [1], [0], [0], [0, 0, 1, 0], [], []>} : vector<8x8xf32>, vector<8x8xf32>, vector<8x8xf32> -> vector<8x8xf32>
    %cst_53 = arith.constant 0.353553385 : f32
    %234 = vector.broadcast %cst_53 : f32 to vector<8x8xf32>
    %235 = arith.mulf %233, %234 : vector<8x8xf32>
    %236 = arith.cmpi sgt, %11, %10 : vector<8x8xi32>
    %cst_54 = arith.constant -1.000000e+30 : f32
    %237 = vector.broadcast %cst_54 : f32 to vector<8x8xf32>
    %238 = arith.select %236, %237, %235 : vector<8x8xi1>, vector<8x8xf32>
    %cst_55 = arith.constant dense<0xFF800000> : vector<8xf32>
    %239 = vector.multi_reduction <maximumf>, %238, %cst_55 [1] : vector<8x8xf32> to vector<8xf32>
    %240 = vector.shape_cast %239 : vector<8xf32> to vector<8x1xf32>
    %241 = vector.broadcast %240 : vector<8x1xf32> to vector<8x8xf32>
    %242 = arith.subf %238, %241 : vector<8x8xf32>
    %243 = math.exp %242 : vector<8x8xf32>
    %cst_56 = arith.constant dense<0.000000e+00> : vector<8xf32>
    %244 = vector.multi_reduction <add>, %243, %cst_56 [1] : vector<8x8xf32> to vector<8xf32>
    %245 = vector.shape_cast %244 : vector<8xf32> to vector<8x1xf32>
    %246 = tpu.reciprocal %245 {approx = true} : vector<8x1xf32> -> vector<8x1xf32>
    %247 = vector.broadcast %246 : vector<8x1xf32> to vector<8x8xf32>
    %248 = arith.mulf %243, %247 : vector<8x8xf32>
    %cst_57 = arith.constant dense<0.000000e+00> : vector<8x8xf32>
    %249 = tpu.matmul %248, %159, %cst_57 {dimension_numbers = #tpu.dot_dimension_numbers<[1], [0], [0], [1], [0, 0, 1, 1], [], []>} : vector<8x8xf32>, vector<8x8xf32>, vector<8x8xf32> -> vector<8x8xf32>
    %250 = vector.extract_strided_slice %5 {offsets = [8, 24], sizes = [8, 8], strides = [1, 1]} : vector<16x64xf32> to vector<8x8xf32>
    %251 = vector.extract_strided_slice %250 {offsets = [0, 0], sizes = [8, 4], strides = [1, 1]} : vector<8x8xf32> to vector<8x4xf32>
    %252 = vector.extract_strided_slice %250 {offsets = [0, 4], sizes = [8, 4], strides = [1, 1]} : vector<8x8xf32> to vector<8x4xf32>
    %253 = arith.mulf %251, %8 : vector<8x4xf32>
    %254 = arith.mulf %252, %9 : vector<8x4xf32>
    %255 = arith.subf %253, %254 : vector<8x4xf32>
    %256 = arith.mulf %251, %9 : vector<8x4xf32>
    %257 = arith.mulf %252, %8 : vector<8x4xf32>
    %258 = arith.addf %256, %257 : vector<8x4xf32>
    %259 = tpu.concatenate %255, %258 in 1 : vector<8x4xf32>, vector<8x4xf32> -> vector<8x8xf32>
    %cst_58 = arith.constant dense<0.000000e+00> : vector<8x8xf32>
    %260 = tpu.matmul %259, %168, %cst_58 {dimension_numbers = #tpu.dot_dimension_numbers<[1], [1], [0], [0], [0, 0, 1, 0], [], []>} : vector<8x8xf32>, vector<8x8xf32>, vector<8x8xf32> -> vector<8x8xf32>
    %cst_59 = arith.constant 0.353553385 : f32
    %261 = vector.broadcast %cst_59 : f32 to vector<8x8xf32>
    %262 = arith.mulf %260, %261 : vector<8x8xf32>
    %263 = arith.cmpi sgt, %11, %10 : vector<8x8xi32>
    %cst_60 = arith.constant -1.000000e+30 : f32
    %264 = vector.broadcast %cst_60 : f32 to vector<8x8xf32>
    %265 = arith.select %263, %264, %262 : vector<8x8xi1>, vector<8x8xf32>
    %cst_61 = arith.constant dense<0xFF800000> : vector<8xf32>
    %266 = vector.multi_reduction <maximumf>, %265, %cst_61 [1] : vector<8x8xf32> to vector<8xf32>
    %267 = vector.shape_cast %266 : vector<8xf32> to vector<8x1xf32>
    %268 = vector.broadcast %267 : vector<8x1xf32> to vector<8x8xf32>
    %269 = arith.subf %265, %268 : vector<8x8xf32>
    %270 = math.exp %269 : vector<8x8xf32>
    %cst_62 = arith.constant dense<0.000000e+00> : vector<8xf32>
    %271 = vector.multi_reduction <add>, %270, %cst_62 [1] : vector<8x8xf32> to vector<8xf32>
    %272 = vector.shape_cast %271 : vector<8xf32> to vector<8x1xf32>
    %273 = tpu.reciprocal %272 {approx = true} : vector<8x1xf32> -> vector<8x1xf32>
    %274 = vector.broadcast %273 : vector<8x1xf32> to vector<8x8xf32>
    %275 = arith.mulf %270, %274 : vector<8x8xf32>
    %cst_63 = arith.constant dense<0.000000e+00> : vector<8x8xf32>
    %276 = tpu.matmul %275, %159, %cst_63 {dimension_numbers = #tpu.dot_dimension_numbers<[1], [0], [0], [1], [0, 0, 1, 1], [], []>} : vector<8x8xf32>, vector<8x8xf32>, vector<8x8xf32> -> vector<8x8xf32>
    %277 = tpu.concatenate %195, %222, %249, %276 in 1 : vector<8x8xf32>, vector<8x8xf32>, vector<8x8xf32>, vector<8x8xf32> -> vector<8x32xf32>
    %cst_64 = arith.constant dense<0.000000e+00> : vector<8x32xf32>
    %278 = tpu.matmul %277, %6, %cst_64 {dimension_numbers = #tpu.dot_dimension_numbers<[1], [0], [0], [1], [0, 0, 1, 1], [], []>} : vector<8x32xf32>, vector<32x32xf32>, vector<8x32xf32> -> vector<8x32xf32>
    %279 = vector.broadcast %7 : vector<1x32xf32> to vector<8x32xf32>
    %280 = arith.addf %278, %279 : vector<8x32xf32>
    %c8 = arith.constant 8 : index
    %c0_65 = arith.constant 0 : index
    %281 = vector.load %arg7[%c8, %c0_65] : memref<16x32xf32, #tpu.memory_space<vmem>>, vector<8x32xf32>
    tpu.vector_store %arg7[%c8, %c0_65], %280 {strides = array<i32>} : memref<16x32xf32, #tpu.memory_space<vmem>>, vector<8x32xf32>,
    return
  }
}

</mosaic_0001>

<bundles_post_ra>
// kernel: _lambda_.1
= control target key start
LH: loop header
LB: loop body
LE: loop exit
PB: predicated region body
PF: predicated region fallthrough
CT: control target
= control target key end

     0   :  { %12 = vsyncpa [#allocation3], 0  ;;  %s2843_s0 = inlined_call_operand.vmem [shape: f32[16,32], index: 0, kind: input, shape index: {}]   ;;  %s2844_s1 = inlined_call_operand.vmem [shape: f32[32,64], index: 1, kind: input, shape index: {}]   ;;  %s2845_s2 = inlined_call_operand.vmem [shape: f32[1,64], index: 2, kind: input, shape index: {}]   ;;  %s2846_s3 = inlined_call_operand.hbm [shape: f32[32,32], index: 3, kind: input, shape index: {}]   ;;  %s2847_s4 = inlined_call_operand.vmem [shape: f32[1,32], index: 4, kind: input, shape index: {}]   ;;  %s2848_s5 = inlined_call_operand.vmem [shape: f32[8,4], index: 5, kind: input, shape index: {}]   ;;  %s2849_s6 = inlined_call_operand.vmem [shape: f32[8,4], index: 6, kind: input, shape index: {}]   ;;  %s2850_s7 = inlined_call_operand.hbm [shape: f32[16,32], index: 7, kind: output, shape index: {}]  }
   0x1   :  { %13 = vsyncpa [#allocation4], 0  ;;  %s2307_s24 = smov [#allocation2]   ;;  %s2259_s28 = scalar_lea.hbm %s2846_s3, 512 }
   0x2   :  { %s25_s25 = sshll.u32 %s2307_s24, 4  ;;  %p2260_p0 = scmp.ne.s32.totalorder %s2846_s3, %s2259_s28  ;;  %s26_s25 = int_to_ptr.vmem [resolvable:$true] %s25_s25 }
   0x3   :  { %p2263_p1 = scmp.lt.u32.totalorder %s2259_s28, %s2846_s3 }
   0x5   :  { %p2265_p2 = pnand %p2263_p1, %p2260_p0 }
   0x7   :  { %2268 = shalt.err (!%p2265_p2)
}
   0x8   :  { %s2269_s10 = scalar_lea.vmem %s26_s25, 512  ;;  %p2274_p4 = scmp.lt.s32.totalorder %s26_s25, %s26_s25 }
   0x9   :  { %p2270_p3 = scmp.ne.s32.totalorder %s26_s25, %s2269_s10  ;;  %p2275_p5 = scmp.lt.s32.totalorder %s2269_s10, %s2269_s10 }
   0xb   :  { %p2276_p6 = por %p2275_p5, %p2274_p4 }
   0xd   :  { %p2277_p7 = pnand %p2276_p6, %p2270_p3 }
   0xf   :  { %2280 = shalt.err (!%p2277_p7)
}
  0x10   :  { %s2308_s11 = smov 128   ;;  %s2309_s12 = smov 8  }
  0x11   :  { %31 = dma.hbm_to_vmem [thread:$0]  %s2846_s3, 512, %s26_s25, [#allocation3], %s2308_s11, %s2308_s11, %s2309_s12  }
  0x12   :  { %2303 = dma.done.wait [#allocation3], 512  }
  0x13   :  { %2304 = vsyncadd [#allocation3], 4294966784  ;;  %vm54_vm0 = vcmask 261120   ;;  %v43_v0 = vld [vmem:[%s2844_s1] sm:$0xff]  ;;  %v44_v1 = vld [vmem:[%s2844_s1 + $0x8] sm:$0xff]  ;;  %s2310_s28 = smov 36  }
  0x14   :  { %v45_v2 = vld [vmem:[%s2844_s1 + $0x10] sm:$0xff]  ;;  %v2178_v3 = vpack.c.bf16 %v44_v1, %v43_v0  ;;  %v46_v4 = vld [vmem:[%s2844_s1 + $0x18] sm:$0xff]  ;;  %v41_v5 = vld [vmem:[%s2843_s0] sm:$0xff]  ;;  %s2311_s1 = smov 4   ;;  %s2312_s30 = smov 32   ;;  %v2314_v21 = vmov 0.0  }
  0x15   :  { %v2182_v6 = vpack.c.bf16 %v46_v4, %v45_v2  ;;  %2073 = vmatprep.mubr.msk.f32.mxu0 %vm54_vm0, %v41_v5  ;;  %v2410_v7 = vld [vmem:[%s2849_s6] sm:$0xff]  ;;  %v42_v9 = vld [vmem:[%s2843_s0 + $0x8] sm:$0xff]  ;;  %s2313_s0 = smov 124   ;;  %2076 = vmatprep.subr.mxu1 %v2314_v21  ;;  %vm2315_vm1 = vmmov 0   ;;  %s2317_s9 = smov 96   ;;  %vm183_vm2 = vcmask 31744  }
  0x16   :  { %v2415_v8 = vld [vmem:[%s2848_s5] sm:$0xff]  ;;  %2179 = vmatprep.subr.bf16.mxu0 %v2178_v3  ;;  %153 = vrot.lane.b32.xlu0 %v2410_v7, %s2310_s28  ;;  %s2318_s10 = smov 12   ;;  %s2319_s13 = smov 44   ;;  %vm245_vm3 = vcmask 64512   ;;  %vm1014_vm5 = vcmask 130048   ;;  %vm1016_vm6 = vcmask 195584  }
  0x17   :  { %2181 = vmatpush3.bf16.msra.mxu0 %v2178_v3  ;;  %231 = vrot.lane.b32.xlu1 %v2415_v8, %s2311_s1  ;;  %v1987_v11 = vld [vmem:[%s2845_s2] ss:$0 sm:$0xff]  ;;  %s2316_s2 = smov 100   ;;  %s2320_s14 = smov 20  }
  0x18   :  { %2183 = vmatprep.subr.bf16.mxu0 %v2182_v6  ;;  %2078 = vmatprep.mubr.msk.f32.mxu1 %vm2315_vm1, %v2314_v21  ;;  %s2321_s15 = smov 28   ;;  %s2322_s16 = smov 40  }
  0x19   :  { %s2323_s17 = smov 16   ;;  %s2324_s18 = smov 24  }
  0x1a   :  { %166 = vrot.lane.b32.xlu0 %v2415_v8, %s2310_s28  ;;  %s2325_s19 = smov 80   ;;  %s2326_s20 = smov 120  }
  0x1b   :  { %2185 = vmatpush3.bf16.msra.mxu0 %v2182_v6  ;;  %148 = vrot.lane.b32.xlu1 %v2415_v8, %s2312_s30  ;;  %s2327_s21 = smov 88   ;;  %s2328_s22 = smov 92  }
  0x1c   :  { %2096 = vmatprep.subr.mxu0 %v2314_v21  ;;  %s2329_s3 = smov 112   ;;  %s2330_s23 = smov 116  }
  0x1d   :  { %s2331_s24 = smov 104   ;;  %s2332_s25 = smov 108  }
  0x1e   :  { %2074 = vmatmul.mubr.msk.f32.vlgmr.msra.gmra.mrb[0].mxu0 %vm54_vm0, %v42_v9  ;;  %162 = vrot.lane.b32.xlu0 %v2410_v7, %s2312_s30  ;;  %s2333_s26 = smov 72  }
  0x1f   :  { %2098 = vmatprep.mubr.msk.f32.mxu0 %vm2315_vm1, %v2314_v21 }
  0x88   :  { %v2427_v10 = vpop.permute.xlu0 %153 }
  0x89   :  { %v2444_v19 = vpop.permute.xlu1 %231 }
  0x8c   :  { %v2436_v16 = vpop.permute.xlu0 %166 }
  0x8d   :  { %v2457_v22 = vpop.permute.xlu1 %148 }
  0x90   :  { %v2459_v23 = vpop.permute.xlu0 %162 }
  0xf1   :  { %v2075_v12 = vpop.f32.mrb[0].mxu0 }
  0xf2   :  { %v2432_v13 = vadd.f32 %v2075_v12, %v1987_v11  ;;  %v127_v14 = vpop.f32.mrb[1].mxu0 }
  0xf3   :  { %v2434_v15 = vadd.f32 %v1987_v11, %v127_v14 }
  0xf5   :  { %v169_v17 = vmul.f32 %v2436_v16, %v2434_v15  ;;  %v156_v18 = vmul.f32 %v2427_v10, %v2434_v15  ;;  %v234_v20 = vmul.f32 %v2444_v19, %v2434_v15  ;;  %v151_v24 = vmul.f32 %v2457_v22, %v2434_v15 }
  0xf6   :  { %v165_v25 = vmul.f32 %v2459_v23, %v2434_v15  ;;  %v230_v30 = vmul.f32 %v2410_v7, %v2434_v15  ;;  %v220_v38 = vmul.f32 %v2415_v8, %v2434_v15 }
  0xf7   :  { %171 = vrot.lane.b32.xlu0 %v169_v17, %s2313_s0  ;;  %158 = vrot.lane.b32.xlu1 %v156_v18, %s2313_s0 }
  0xfb   :  { %236 = vrot.lane.b32.xlu0 %v234_v20, %s2313_s0  ;;  %221 = vrot.lane.b32.xlu1 %v2410_v7, %s2311_s1  ;;  %v143_v20 = vlaneseq }
 0x169   :  { %v172_v26 = vpop.permute.xlu0 %171  ;;  %v159_v27 = vpop.permute.xlu1 %158 }
 0x16a   :  { %v174_v28 = vadd.f32 %v172_v26, %v165_v25  ;;  %v161_v29 = vsub.f32 %v151_v24, %v159_v27  ;;  %v144_v24 = vshrl.u32 %v143_v20, 7  ;;  %v146_v25 = vand.u32 127, %v143_v20 }
 0x16c   :  { %180 = vrot.lane.b32.xlu0 %v174_v28, %s2316_s2  ;;  %176 = vrot.lane.b32.xlu1 %v161_v29, %s2317_s9  ;;  %vm2567_vm4 = vcmp.gt.s32.totalorder %v146_v25, %v144_v24 }
 0x16d   :  { %v237_v31 = vpop.permute.xlu0 %236  ;;  %v2469_v32 = vpop.permute.xlu1 %221 }
 0x16e   :  { %v239_v33 = vadd.f32 %v237_v31, %v230_v30  ;;  %v224_v34 = vmul.f32 %v2469_v32, %v2434_v15 }
 0x170   :  { %241 = vrot.lane.b32.xlu0 %v239_v33, %s2311_s1  ;;  %226 = vrot.lane.b32.xlu1 %v224_v34, %s2313_s0 }
 0x174   :  { %430 = vrot.lane.b32.xlu0 %v2415_v8, %s2318_s10  ;;  %417 = vrot.lane.b32.xlu1 %v2410_v7, %s2318_s10 }
 0x178   :  { %202 = vrot.lane.b32.xlu0 %v2415_v8, %s2319_s13  ;;  %189 = vrot.lane.b32.xlu1 %v2410_v7, %s2319_s13 }
 0x17c   :  { %611 = vrot.lane.b32.xlu0 %v2410_v7, %s2320_s14 }
 0x180   :  { %624 = vrot.lane.b32.xlu0 %v2415_v8, %s2320_s14 }
 0x184   :  { %811 = vrot.lane.b32.xlu0 %v2410_v7, %s2321_s15 }
 0x188   :  { %824 = vrot.lane.b32.xlu0 %v2415_v8, %s2321_s15 }
 0x18c   :  { %413 = vrot.lane.b32.xlu0 %v2415_v8, %s2309_s12 }
 0x190   :  { %426 = vrot.lane.b32.xlu0 %v2410_v7, %s2309_s12 }
 0x194   :  { %185 = vrot.lane.b32.xlu0 %v2415_v8, %s2322_s16 }
 0x198   :  { %198 = vrot.lane.b32.xlu0 %v2410_v7, %s2322_s16 }
 0x1de   :  { %v181_v35 = vpop.permute.xlu0 %180  ;;  %v177_v36 = vpop.permute.xlu1 %176 }
 0x1df   :  { %v2490_v37 = vsel %vm183_vm2, %v177_v36, %v181_v35 }
 0x1e0   :  { %2077 = vmatpush3.xpose.msk.msra.mxu1 %vm245_vm3, %v2490_v37 }
 0x1e1   :  { %2081 = vmatprep.subr.mxu1 %v2314_v21 }
 0x1e2   :  { %v242_v39 = vpop.permute.xlu0 %241  ;;  %v227_v40 = vpop.permute.xlu1 %226 }
 0x1e3   :  { %v229_v41 = vsub.f32 %v220_v38, %v227_v40 }
 0x1e5   :  { %v244_v42 = vsel %vm183_vm2, %v229_v41, %v242_v39 }
 0x1e6   :  { %v2498_v43 = vpop.permute.xlu0 %430  ;;  %2079 = vmatmul.mubr.msk.f32.vlgmr.msra.gmra.mrb[0].mxu1 %vm245_vm3, %v244_v42  ;;  %v2501_v44 = vpop.permute.xlu1 %417 }
 0x1e7   :  { %v420_v45 = vmul.f32 %v2501_v44, %v2434_v15  ;;  %2083 = vmatprep.mubr.msk.f32.mxu1 %vm2315_vm1, %v2314_v21  ;;  %v433_v33 = vmul.f32 %v2498_v43, %v2434_v15 }
 0x1e9   :  { %422 = vrot.lane.b32.xlu0 %v420_v45, %s2313_s0 }
 0x1ea   :  { %v2508_v46 = vpop.permute.xlu0 %202  ;;  %v2510_v47 = vpop.permute.xlu1 %189 }
 0x1eb   :  { %v192_v48 = vmul.f32 %v2510_v47, %v2434_v15  ;;  %v205_v50 = vmul.f32 %v2508_v46, %v2434_v15 }
 0x1ed   :  { %194 = vrot.lane.b32.xlu0 %v192_v48, %s2313_s0 }
 0x1ee   :  { %v2515_v49 = vpop.permute.xlu0 %611 }
 0x1ef   :  { %v614_v34 = vmul.f32 %v2515_v49, %v2434_v15 }
 0x1f1   :  { %207 = vrot.lane.b32.xlu0 %v205_v50, %s2313_s0 }
 0x1f2   :  { %v2520_v51 = vpop.permute.xlu0 %624 }
 0x1f3   :  { %v627_v53 = vmul.f32 %v2520_v51, %v2434_v15 }
 0x1f5   :  { %607 = vrot.lane.b32.xlu0 %v2415_v8, %s2323_s17 }
 0x1f6   :  { %v2526_v52 = vpop.permute.xlu0 %811 }
 0x1f7   :  { %v814_v35 = vmul.f32 %v2526_v52, %v2434_v15 }
 0x1f9   :  { %620 = vrot.lane.b32.xlu0 %v2410_v7, %s2323_s17 }
 0x1fa   :  { %v2531_v54 = vpop.permute.xlu0 %824 }
 0x1fb   :  { %v827_v55 = vmul.f32 %v2531_v54, %v2434_v15 }
 0x1fd   :  { %629 = vrot.lane.b32.xlu0 %v627_v53, %s2313_s0 }
 0x1fe   :  { %v2540_v56 = vpop.permute.xlu0 %413 }
 0x1ff   :  { %v416_v60 = vmul.f32 %v2540_v56, %v2434_v15 }
 0x201   :  { %820 = vrot.lane.b32.xlu0 %v2410_v7, %s2324_s18 }
 0x202   :  { %v2542_v57 = vpop.permute.xlu0 %426 }
 0x203   :  { %v429_v39 = vmul.f32 %v2542_v57, %v2434_v15 }
 0x205   :  { %829 = vrot.lane.b32.xlu0 %v827_v55, %s2313_s0 }
 0x206   :  { %v2544_v58 = vpop.permute.xlu0 %185 }
 0x207   :  { %v188_v63 = vmul.f32 %v2544_v58, %v2434_v15 }
 0x209   :  { %337 = vrot.lane.b32.xlu0 %v2434_v15, %s2325_s19 }
 0x20a   :  { %v2546_v59 = vpop.permute.xlu0 %198 }
 0x20b   :  { %v201_v48 = vmul.f32 %v2546_v59, %v2434_v15 }
 0x25b   :  { %v423_v61 = vpop.permute.xlu0 %422 }
 0x25c   :  { %v425_v62 = vsub.f32 %v416_v60, %v423_v61 }
 0x25e   :  { %440 = vrot.lane.b32.xlu0 %v425_v62, %s2326_s20 }
 0x25f   :  { %v195_v0 = vpop.permute.xlu0 %194 }
 0x260   :  { %v197_v1 = vsub.f32 %v188_v63, %v195_v0 }
 0x263   :  { %v208_v2 = vpop.permute.xlu0 %207 }
 0x264   :  { %v210_v50 = vadd.f32 %v208_v2, %v201_v48  ;;  %v1707_v48 = vmul.f32 %v2531_v54, %v2432_v13 }
 0x267   :  { %v2553_v3 = vpop.permute.xlu0 %607 }
 0x268   :  { %v610_v55 = vmul.f32 %v2553_v3, %v2434_v15 }
 0x26b   :  { %v2555_v4 = vpop.permute.xlu0 %620 }
 0x26c   :  { %v623_v5 = vmul.f32 %v2555_v4, %v2434_v15 }
 0x26f   :  { %v630_v6 = vpop.permute.xlu0 %629 }
 0x270   :  { %v632_v9 = vadd.f32 %v630_v6, %v623_v5 }
 0x273   :  { %v2559_v11 = vpop.permute.xlu0 %820 }
 0x274   :  { %v823_v12 = vmul.f32 %v2559_v11, %v2434_v15 }
 0x277   :  { %v830_v14 = vpop.permute.xlu0 %829 }
 0x278   :  { %v832_v17 = vadd.f32 %v830_v14, %v823_v12 }
 0x27b   :  { %v2563_v18 = vpop.permute.xlu0 %337 }
 0x27c   :  { %2082 = vmatpush3.msra.mxu1 %v2563_v18 }
 0x27d   :  { %2086 = vmatprep.subr.mxu1 %v2314_v21 }
 0x2b9   :  { %v318_v26 = vpop.f32.mrb[0].mxu1 }
 0x2ba   :  { %v322_v28 = vmul.f32 0.35355338, %v318_v26  ;;  %v2080_v29 = vpop.f32.mrb[1].mxu1 }
 0x2bc   :  { %v324_v30 = vsel %vm2567_vm4, -1e+30, %v322_v28 }
 0x2bd   :  { %v325_v31 = vsel %vm245_vm3, %v324_v30, -inf }
 0x2be   :  { %326 = vmax.xlane.f32.xlu1 %v325_v31 }
 0x2cf   :  { %435 = vrot.lane.b32.xlu1 %v433_v33, %s2313_s0 }
 0x2d0   :  { %v441_v2 = vpop.permute.xlu0 %440 }
 0x2d3   :  { %616 = vrot.lane.b32.xlu1 %v614_v34, %s2313_s0 }
 0x2d7   :  { %807 = vrot.lane.b32.xlu1 %v2415_v8, %s2324_s18 }
 0x2db   :  { %816 = vrot.lane.b32.xlu1 %v814_v35, %s2313_s0 }
 0x34b   :  { %v327_v36 = vpop.xlane.xlu1 %326 }
 0x34c   :  { %v328_v38 = vsub.f32 %v324_v30, %v327_v36 }
 0x34e   :  { %v329_v40 = vmul.f32 1.442695, %v328_v38 }
 0x34f   :  { %v436_v41 = vpop.permute.xlu1 %435 }
 0x350   :  { %2227 = vpow2.f32 %v329_v40  ;;  %v438_v42 = vadd.f32 %v436_v41, %v429_v39  ;;  %v1099_v40 = vmul.f32 %v2427_v10, %v2432_v13  ;;  %v1519_v41 = vmul.f32 %v2520_v51, %v2432_v13 }
 0x352   :  { %444 = vrot.lane.b32.xlu0 %v438_v42, %s2313_s0 }
 0x353   :  { %v617_v45 = vpop.permute.xlu1 %616 }
 0x354   :  { %v619_v62 = vsub.f32 %v610_v55, %v617_v45 }
 0x356   :  { %212 = vrot.lane.b32.xlu0 %v197_v1, %s2327_s21 }
 0x357   :  { %v2594_v60 = vpop.permute.xlu1 %807 }
 0x358   :  { %v810_v0 = vmul.f32 %v2594_v60, %v2434_v15 }
 0x35a   :  { %v2228_v53 = vpop.eup %2227  ;;  %216 = vrot.lane.b32.xlu0 %v210_v50, %s2328_s22 }
 0x35b   :  { %v331_v61 = vsel %vm245_vm3, %v2228_v53, 0.0  ;;  %v817_v63 = vpop.permute.xlu1 %816 }
 0x35c   :  { %332 = vadd.xlane.f32.xlu1 %v331_v61  ;;  %v819_v1 = vsub.f32 %v810_v0, %v817_v63 }
 0x35e   :  { %634 = vrot.lane.b32.xlu0 %v619_v62, %s2329_s3 }
 0x362   :  { %638 = vrot.lane.b32.xlu0 %v632_v9, %s2330_s23 }
 0x366   :  { %834 = vrot.lane.b32.xlu0 %v819_v1, %s2331_s24 }
 0x36a   :  { %838 = vrot.lane.b32.xlu0 %v832_v17, %s2332_s25 }
 0x3c4   :  { %v445_v5 = vpop.permute.xlu0 %444 }
 0x3c5   :  { %v447_v31 = vsel %vm183_vm2, %v441_v2, %v445_v5  ;;  %v1518_v5 = vmul.f32 %v2555_v4, %v2432_v13 }
 0x3c8   :  { %v213_v6 = vpop.permute.xlu0 %212 }
 0x3cc   :  { %v217_v12 = vpop.permute.xlu0 %216 }
 0x3cd   :  { %v219_v14 = vsel %vm183_vm2, %v213_v6, %v217_v12 }
 0x3ce   :  { %2097 = vmatpush3.xpose.msk.msra.mxu0 %vm245_vm3, %v219_v14 }
 0x3cf   :  { %2106 = vmatprep.subr.mxu0 %v2314_v21 }
 0x3d0   :  { %v635_v20 = vpop.permute.xlu0 %634 }
 0x3d4   :  { %v639_v24 = vpop.permute.xlu0 %638 }
 0x3d5   :  { %v641_v9 = vsel %vm183_vm2, %v635_v20, %v639_v24 }
 0x3d6   :  { %2099 = vmatmul.mubr.msk.f32.vlgmr.msra.gmra.mrb[2].mxu0 %vm245_vm3, %v641_v9 }
 0x3d7   :  { %2107 = vmatpush3.xpose.msk.msra.mxu0 %vm245_vm3, %v219_v14  ;;  %2108 = vmatprep.mubr.msk.f32.mxu0 %vm2315_vm1, %v2314_v21 }
 0x3d8   :  { %v835_v17 = vpop.permute.xlu0 %834 }
 0x3dc   :  { %v839_v25 = vpop.permute.xlu0 %838 }
 0x3dd   :  { %v841_v26 = vsel %vm183_vm2, %v835_v17, %v839_v25 }
 0x3de   :  { %2109 = vmatmul.mubr.msk.f32.vlgmr.msra.gmra.mrb[4].mxu0 %vm245_vm3, %v841_v26 }
 0x3df   :  { %2124 = vmatprep.mubr.msk.f32.mxu0 %vm2315_vm1, %v2314_v21 }
 0x3e9   :  { %v333_v28 = vpop.xlane.xlu1 %332 }
 0x3ea   :  { %2229 = vrcp.f32 %v333_v28 }
 0x3f4   :  { %v2230_v29 = vpop.eup %2229 }
 0x3f5   :  { %v335_v30 = vmul.f32 %v2230_v29, %v2228_v53 }
 0x3f7   :  { %2084 = vmatmul.mubr.msk.f32.vlgmr.msra.gmra.mrb[2].mxu1 %vm245_vm3, %v335_v30 }
 0x3f8   :  { %2087 = vmatpush3.xpose.msk.msra.mxu1 %vm245_vm3, %v2490_v37  ;;  %2088 = vmatprep.mubr.msk.f32.mxu1 %vm2315_vm1, %v2314_v21 }
 0x3f9   :  { %2091 = vmatprep.subr.mxu1 %v2314_v21 }
 0x3fb   :  { %2089 = vmatmul.mubr.msk.f32.vlgmr.msra.gmra.mrb[4].mxu1 %vm245_vm3, %v447_v31 }
 0x3fc   :  { %2092 = vmatpush3.msra.mxu1 %v2563_v18  ;;  %2093 = vmatprep.mubr.msk.f32.mxu1 %vm2315_vm1, %v2314_v21  ;;  %v1129_v18 = vmul.f32 %v2508_v46, %v2432_v13 }
 0x3fd   :  { %2101 = vmatprep.subr.mxu1 %v2314_v21 }
 0x4a9   :  { %v714_v33 = vpop.f32.mrb[2].mxu0 }
 0x4aa   :  { %v718_v34 = vmul.f32 0.35355338, %v714_v33  ;;  %v2100_v35 = vpop.f32.mrb[3].mxu0  ;;  %v1106_v33 = vmul.f32 %v2436_v16, %v2432_v13  ;;  %v1512_v16 = vmul.f32 %v2515_v49, %v2432_v13  ;;  %v1105_v49 = vmul.f32 %v2459_v23, %v2432_v13 }
 0x4ab   :  { %v1330_v35 = vmul.f32 %v2501_v44, %v2432_v13  ;;  %v1098_v44 = vmul.f32 %v2457_v22, %v2432_v13  ;;  %v1151_v22 = vmul.f32 %v2410_v7, %v2432_v13  ;;  %v1329_v23 = vmul.f32 %v2540_v56, %v2432_v13 }
 0x4ac   :  { %v719_v37 = vsel %vm2567_vm4, -1e+30, %v718_v34  ;;  %v1152_v34 = vmul.f32 %v2444_v19, %v2432_v13  ;;  %v1700_v19 = vmul.f32 %v2526_v52, %v2432_v13 }
 0x4ad   :  { %v720_v36 = vsel %vm245_vm3, %v719_v37, -inf }
 0x4ae   :  { %721 = vmax.xlane.f32.xlu0 %v720_v36 }
 0x4b1   :  { %v911_v38 = vpop.f32.mrb[4].mxu0 }
 0x4b2   :  { %v2110_v39 = vpop.f32.mrb[5].mxu0  ;;  %v915_v10 = vmul.f32 0.35355338, %v911_v38 }
 0x4b4   :  { %v916_v51 = vsel %vm2567_vm4, -1e+30, %v915_v10 }
 0x4b5   :  { %v917_v62 = vsel %vm245_vm3, %v916_v51, -inf }
 0x4c4   :  { %1101 = vrot.lane.b32.xlu0 %v1099_v40, %s2313_s0 }
 0x4c8   :  { %1131 = vrot.lane.b32.xlu0 %v1129_v18, %s2313_s0 }
 0x4ca   :  { %v2638_v42 = vpop.f32.mrb[2].mxu1 }
 0x4cb   :  { %v2085_v45 = vpop.f32.mrb[3].mxu1 }
 0x4cc   :  { %1521 = vrot.lane.b32.xlu0 %v1519_v41, %s2313_s0 }
 0x4ce   :  { %v517_v50 = vpop.f32.mrb[4].mxu1 }
 0x4cf   :  { %v521_v53 = vmul.f32 0.35355338, %v517_v50  ;;  %v2090_v55 = vpop.f32.mrb[5].mxu1  ;;  %v1145_v50 = vmul.f32 %v2469_v32, %v2432_v13  ;;  %v1336_v32 = vmul.f32 %v2542_v57, %v2432_v13 }
 0x4d0   :  { %1709 = vrot.lane.b32.xlu0 %v1707_v48, %s2313_s0 }
 0x4d1   :  { %v522_v46 = vsel %vm2567_vm4, -1e+30, %v521_v53 }
 0x4d2   :  { %v523_v61 = vsel %vm245_vm3, %v522_v46, -inf }
 0x4d3   :  { %524 = vmax.xlane.f32.xlu1 %v523_v61 }
 0x4d7   :  { %918 = vmax.xlane.f32.xlu1 %v917_v62  ;;  %v1121_v62 = vmul.f32 %v2544_v58, %v2432_v13 }
 0x53b   :  { %v722_v63 = vpop.xlane.xlu0 %721 }
 0x53c   :  { %v723_v54 = vsub.f32 %v719_v37, %v722_v63  ;;  %v1337_v37 = vmul.f32 %v2498_v43, %v2432_v13 }
 0x53e   :  { %v724_v0 = vmul.f32 1.442695, %v723_v54  ;;  %v1511_v54 = vmul.f32 %v2553_v3, %v2432_v13 }
 0x53f   :  { %v1102_v1 = vpop.permute.xlu0 %1101 }
 0x540   :  { %2231 = vpow2.f32 %v724_v0  ;;  %v1104_v43 = vsub.f32 %v1098_v44, %v1102_v1 }
 0x543   :  { %v2650_v2 = vpop.permute.xlu0 %1131 }
 0x547   :  { %v1522_v6 = vpop.permute.xlu0 %1521 }
 0x548   :  { %v2654_v12 = vadd.f32 %v1522_v6, %v1518_v5  ;;  %v1699_v5 = vmul.f32 %v2594_v60, %v2432_v13  ;;  %v1144_v60 = vmul.f32 %v2415_v8, %v2432_v13 }
 0x54a   :  { %v2232_v14 = vpop.eup %2231 }
 0x54b   :  { %v726_v20 = vsel %vm245_vm3, %v2232_v14, 0.0 }
 0x54c   :  { %727 = vadd.xlane.f32.xlu1 %v726_v20  ;;  %v136_v20 = vld [vmem:[#allocation2] sm:$0xff] }
 0x560   :  { %v525_v24 = vpop.xlane.xlu1 %524 }
 0x561   :  { %v526_v9 = vsub.f32 %v522_v46, %v525_v24  ;;  %v137_v24 = vld [vmem:[#allocation2 + $0x8] sm:$0xff] }
 0x562   :  { %v2717_v58 = vpack.c.bf16 %v137_v24, %v136_v20 }
 0x563   :  { %v527_v26 = vmul.f32 1.442695, %v526_v9  ;;  %v2334_v9 = vmov 0.0|0.0  }
 0x564   :  { %v919_v17 = vpop.xlane.xlu1 %918  ;;  %2186 = vmatprep.subr.bf16.mxu0 %v2334_v9 }
 0x565   :  { %v920_v25 = vsub.f32 %v916_v51, %v919_v17  ;;  %v1710_v17 = vpop.permute.xlu0 %1709  ;;  %2188 = vmatpush3.bf16.msra.mxu0 %v2717_v58 }
 0x566   :  { %2189 = vmatprep.subr.bf16.mxu0 %v2334_v9 }
 0x567   :  { %v921_v28 = vmul.f32 1.442695, %v920_v25 }
 0x569   :  { %2233 = vpow2.f32 %v921_v28 }
 0x56a   :  { %2235 = vpow2.f32 %v527_v26 }
 0x573   :  { %v2234_v29 = vpop.eup %2233 }
 0x574   :  { %v923_v30 = vsel %vm245_vm3, %v2234_v29, 0.0  ;;  %v2236_v31 = vpop.eup %2235 }
 0x575   :  { %924 = vadd.xlane.f32.xlu1 %v923_v30  ;;  %v529_v4 = vsel %vm245_vm3, %v2236_v31, 0.0 }
 0x579   :  { %530 = vadd.xlane.f32.xlu1 %v529_v4  ;;  %v138_v4 = vld [vmem:[#allocation2 + $0x10] sm:$0xff] }
 0x58a   :  { %731 = vrot.lane.b32.xlu1 %v2434_v15, %s2333_s26  ;;  %v1122_v15 = vmul.f32 %v2510_v47, %v2432_v13 }
 0x58e   :  { %1108 = vrot.lane.b32.xlu1 %v1106_v33, %s2313_s0  ;;  %v139_v33 = vld [vmem:[#allocation2 + $0x18] sm:$0xff] }
 0x592   :  { %1154 = vrot.lane.b32.xlu1 %v1152_v34, %s2313_s0  ;;  %v2730_v34 = vpack.c.bf16 %v139_v33, %v138_v4 }
 0x594   :  { %2191 = vmatpush3.bf16.msra.mxu0 %v2730_v34 }
 0x595   :  { %2137 = vmatprep.subr.mxu0 %v2314_v21 }
 0x596   :  { %1332 = vrot.lane.b32.xlu1 %v1330_v35, %s2313_s0 }
 0x59a   :  { %1339 = vrot.lane.b32.xlu1 %v1337_v37, %s2313_s0 }
 0x59e   :  { %1124 = vrot.lane.b32.xlu1 %v1122_v15, %s2313_s0 }
 0x5a2   :  { %1514 = vrot.lane.b32.xlu1 %v1512_v16, %s2313_s0 }
 0x5a6   :  { %1702 = vrot.lane.b32.xlu1 %v1700_v19, %s2313_s0  ;;  %v1128_v19 = vmul.f32 %v2546_v59, %v2432_v13 }
 0x5aa   :  { %1113 = vrot.lane.b32.xlu1 %v1104_v43, %s2317_s9  ;;  %v1134_v43 = vadd.f32 %v2650_v2, %v1128_v19 }
 0x5d9   :  { %v728_v36 = vpop.xlane.xlu1 %727 }
 0x602   :  { %v925_v47 = vpop.xlane.xlu1 %924 }
 0x606   :  { %v531_v38 = vpop.xlane.xlu1 %530 }
 0x607   :  { %2237 = vrcp.f32 %v531_v38 }
 0x608   :  { %2239 = vrcp.f32 %v728_v36  ;;  %v1706_v36 = vmul.f32 %v2559_v11, %v2432_v13 }
 0x609   :  { %2241 = vrcp.f32 %v925_v47 }
 0x60a   :  { %v732_v39 = vpop.permute.xlu1 %731  ;;  %v1712_v59 = vadd.f32 %v1710_v17, %v1706_v36 }
 0x60e   :  { %v1109_v40 = vpop.permute.xlu1 %1108 }
 0x60f   :  { %v1111_v52 = vadd.f32 %v1109_v40, %v1105_v49 }
 0x611   :  { %v2238_v18 = vpop.eup %2237  ;;  %1117 = vrot.lane.b32.xlu0 %v1111_v52, %s2316_s2 }
 0x612   :  { %v533_v41 = vmul.f32 %v2238_v18, %v2236_v31  ;;  %v1155_v45 = vpop.permute.xlu1 %1154  ;;  %v2240_v48 = vpop.eup %2239 }
 0x613   :  { %v1157_v10 = vadd.f32 %v1155_v45, %v1151_v22  ;;  %v730_v53 = vmul.f32 %v2240_v48, %v2232_v14  ;;  %v2242_v7 = vpop.eup %2241 }
 0x614   :  { %2094 = vmatmul.mubr.msk.f32.vlgmr.msra.gmra.mrb[6].mxu1 %vm245_vm3, %v533_v41  ;;  %v927_v56 = vmul.f32 %v2242_v7, %v2234_v29 }
 0x615   :  { %2102 = vmatpush3.msra.mxu1 %v732_v39  ;;  %1147 = vrot.lane.b32.xlu0 %v1145_v50, %s2313_s0 }
 0x616   :  { %1159 = vrot.lane.b32.xlu1 %v1157_v10, %s2311_s1  ;;  %v1333_v55 = vpop.permute.xlu1 %1332  ;;  %2103 = vmatprep.mubr.msk.f32.mxu1 %vm2315_vm1, %v2314_v21 }
 0x617   :  { %v1335_v46 = vsub.f32 %v1329_v23, %v1333_v55  ;;  %2111 = vmatprep.subr.mxu1 %v2314_v21 }
 0x618   :  { %2104 = vmatmul.mubr.msk.f32.vlgmr.msra.gmra.mrb[8].mxu1 %vm245_vm3, %v730_v53 }
 0x619   :  { %2112 = vmatpush3.msra.mxu1 %v732_v39  ;;  %1344 = vrot.lane.b32.xlu0 %v1335_v46, %s2326_s20 }
 0x61a   :  { %v1340_v61 = vpop.permute.xlu1 %1339  ;;  %2113 = vmatprep.mubr.msk.f32.mxu1 %vm2315_vm1, %v2314_v21  ;;  %2127 = vmatprep.subr.mxu1 %v2314_v21 }
 0x61b   :  { %v1342_v51 = vadd.f32 %v1340_v61, %v1336_v32 }
 0x61c   :  { %2114 = vmatmul.mubr.msk.f32.vlgmr.msra.gmra.mrb[10].mxu1 %vm245_vm3, %v927_v56 }
 0x61d   :  { %2129 = vmatprep.mubr.msk.f32.mxu1 %vm2315_vm1, %v2314_v21 }
 0x61e   :  { %v1125_v57 = vpop.permute.xlu1 %1124 }
 0x61f   :  { %v1127_v63 = vsub.f32 %v1121_v62, %v1125_v57  ;;  %v2785_v62 = vld [vmem:[%s2847_s4] ss:$0 sm:$0xff]  ;;  %s2335_s4 = smov [#allocation5]  }
 0x620   :  { %s1975_s1 = sshll.u32 %s2335_s4, 4  ;;  %s1976_s1 = int_to_ptr.vmem [resolvable:$true] %s1975_s1 }
 0x621   :  { %s2281_s6 = scalar_lea.vmem %s1976_s1, 256  ;;  %p2286_p9 = scmp.lt.s32.totalorder %s1976_s1, %s1976_s1 }
 0x622   :  { %v1515_v0 = vpop.permute.xlu1 %1514  ;;  %p2282_p8 = scmp.ne.s32.totalorder %s1976_s1, %s2281_s6  ;;  %p2287_p10 = scmp.lt.s32.totalorder %s2281_s6, %s2281_s6 }
 0x623   :  { %v1517_v1 = vsub.f32 %v1511_v54, %v1515_v0 }
 0x624   :  { %p2288_p11 = por %p2287_p10, %p2286_p9 }
 0x626   :  { %v1703_v6 = vpop.permute.xlu1 %1702  ;;  %p2289_p12 = pnand %p2288_p11, %p2282_p8 }
 0x627   :  { %v1705_v14 = vsub.f32 %v1699_v5, %v1703_v6 }
 0x62a   :  { %v1114_v3 = vpop.permute.xlu1 %1113 }
 0x683   :  { %v1118_v25 = vpop.permute.xlu0 %1117 }
 0x684   :  { %v1120_v26 = vsel %vm183_vm2, %v1114_v3, %v1118_v25 }
 0x685   :  { %2128 = vmatpush3.xpose.msk.msra.mxu1 %vm245_vm3, %v1120_v26 }
 0x686   :  { %2132 = vmatprep.subr.mxu1 %v2314_v21 }
 0x687   :  { %v1148_v28 = vpop.permute.xlu0 %1147 }
 0x688   :  { %v1150_v29 = vsub.f32 %v1144_v60, %v1148_v28  ;;  %v1160_v30 = vpop.permute.xlu1 %1159 }
 0x68a   :  { %v1162_v31 = vsel %vm183_vm2, %v1150_v29, %v1160_v30 }
 0x68b   :  { %2130 = vmatmul.mubr.msk.f32.vlgmr.msra.gmra.mrb[12].mxu1 %vm245_vm3, %v1162_v31  ;;  %v1345_v38 = vpop.permute.xlu0 %1344 }
 0x68c   :  { %2134 = vmatprep.mubr.msk.f32.mxu1 %vm2315_vm1, %v2314_v21 }
 0x6e7   :  { %v603_v8 = vpop.f32.mrb[6].mxu1 }
 0x6e8   :  { %1002 = vrot.lane.b32.xlu1 %v603_v8, %s2309_s12  ;;  %v2095_v35 = vpop.f32.mrb[7].mxu1 }
 0x6eb   :  { %v803_v37 = vpop.f32.mrb[8].mxu1 }
 0x6ec   :  { %1006 = vrot.lane.b32.xlu1 %v803_v37, %s2323_s17  ;;  %v2105_v15 = vpop.f32.mrb[9].mxu1 }
 0x6ef   :  { %v997_v16 = vpop.f32.mrb[10].mxu1 }
 0x6f0   :  { %1348 = vrot.lane.b32.xlu1 %v1342_v51, %s2313_s0  ;;  %1010 = vrot.lane.b32.xlu0 %v997_v16, %s2324_s18  ;;  %v2115_v44 = vpop.f32.mrb[11].mxu1 }
 0x6f4   :  { %1140 = vrot.lane.b32.xlu1 %v1134_v43, %s2328_s22  ;;  %1136 = vrot.lane.b32.xlu0 %v1127_v63, %s2327_s21 }
 0x6f8   :  { %1530 = vrot.lane.b32.xlu1 %v2654_v12, %s2330_s23  ;;  %1526 = vrot.lane.b32.xlu0 %v1517_v1, %s2329_s3 }
 0x6fc   :  { %1718 = vrot.lane.b32.xlu1 %v1712_v59, %s2332_s25  ;;  %1714 = vrot.lane.b32.xlu0 %v1705_v14, %s2331_s24 }
 0x75a   :  { %v1003_v47 = vpop.permute.xlu1 %1002 }
 0x75b   :  { %v1013_v11 = vsel %vm245_vm3, %v2638_v42, %v1003_v47 }
 0x75e   :  { %v1007_v2 = vpop.permute.xlu1 %1006  ;;  %v1235_v39 = vpop.f32.mrb[12].mxu1 }
 0x75f   :  { %v1239_v49 = vmul.f32 0.35355338, %v1235_v39  ;;  %v2131_v40 = vpop.f32.mrb[13].mxu1  ;;  %v1015_v52 = vsel %vm1014_vm5, %v1013_v11, %v1007_v2 }
 0x761   :  { %v1240_v12 = vsel %vm2567_vm4, -1e+30, %v1239_v49 }
 0x762   :  { %v1349_v18 = vpop.permute.xlu1 %1348  ;;  %v1011_v22 = vpop.permute.xlu0 %1010  ;;  %v1241_v41 = vsel %vm245_vm3, %v1240_v12, -inf }
 0x763   :  { %v1017_v45 = vsel %vm1016_vm6, %v1015_v52, %v1011_v22  ;;  %1242 = vmax.xlane.f32.xlu0 %v1241_v41  ;;  %v1351_v50 = vsel %vm183_vm2, %v1345_v38, %v1349_v18 }
 0x764   :  { %2125 = vmatmul.mubr.msk.f32.vlgmr.msra.gmra.mrb[6].mxu0 %vm54_vm0, %v1017_v45 }
 0x765   :  { %2138 = vmatpush3.xpose.msk.msra.mxu0 %vm245_vm3, %v1120_v26  ;;  %2139 = vmatprep.mubr.msk.f32.mxu0 %vm2315_vm1, %v2314_v21 }
 0x766   :  { %v1141_v42 = vpop.permute.xlu1 %1140  ;;  %v1137_v48 = vpop.permute.xlu0 %1136  ;;  %2147 = vmatprep.subr.mxu0 %v2314_v21 }
 0x767   :  { %v1143_v10 = vsel %vm183_vm2, %v1137_v48, %v1141_v42 }
 0x768   :  { %2140 = vmatmul.mubr.msk.f32.vlgmr.msra.gmra.mrb[8].mxu0 %vm245_vm3, %v1351_v50 }
 0x769   :  { %2148 = vmatpush3.xpose.msk.msra.mxu0 %vm245_vm3, %v1143_v10  ;;  %2149 = vmatprep.mubr.msk.f32.mxu0 %vm2315_vm1, %v2314_v21 }
 0x76a   :  { %v1531_v23 = vpop.permute.xlu1 %1530  ;;  %v1527_v53 = vpop.permute.xlu0 %1526  ;;  %2157 = vmatprep.subr.mxu0 %v2314_v21 }
 0x76b   :  { %v1533_v55 = vsel %vm183_vm2, %v1527_v53, %v1531_v23 }
 0x76c   :  { %2150 = vmatmul.mubr.msk.f32.vlgmr.msra.gmra.mrb[10].mxu0 %vm245_vm3, %v1533_v55 }
 0x76d   :  { %2158 = vmatpush3.xpose.msk.msra.mxu0 %vm245_vm3, %v1143_v10  ;;  %2159 = vmatprep.mubr.msk.f32.mxu0 %vm2315_vm1, %v2314_v21 }
 0x76e   :  { %v1719_v7 = vpop.permute.xlu1 %1718  ;;  %v1715_v46 = vpop.permute.xlu0 %1714  ;;  %2192 = vmatprep.subr.bf16.mxu0 %v2334_v9 }
 0x76f   :  { %v1721_v32 = vsel %vm183_vm2, %v1715_v46, %v1719_v7 }
 0x770   :  { %2160 = vmatmul.mubr.msk.f32.vlgmr.msra.gmra.mrb[12].mxu0 %vm245_vm3, %v1721_v32 }
 0x771   :  { %2194 = vmatpush3.bf16.msra.mxu0 %v2717_v58  ;;  %2175 = vmatprep.mubr.msk.f32.mxu0 %vm2315_vm1, %v2314_v21 }
 0x772   :  { %2195 = vmatprep.subr.bf16.mxu0 %v2334_v9 }
 0x775   :  { %2197 = vmatpush3.bf16.msra.mxu0 %v2730_v34 }
 0x7f0   :  { %v1243_v56 = vpop.xlane.xlu0 %1242 }
 0x7f1   :  { %v1244_v61 = vsub.f32 %v1240_v12, %v1243_v56 }
 0x7f3   :  { %v1245_v51 = vmul.f32 1.442695, %v1244_v61 }
 0x7f5   :  { %2243 = vpow2.f32 %v1245_v51 }
 0x7ff   :  { %v2244_v24 = vpop.eup %2243 }
 0x800   :  { %v1247_v26 = vsel %vm245_vm3, %v2244_v24, 0.0 }
 0x837   :  { %v1093_v57 = vpop.f32.mrb[6].mxu0 }
 0x838   :  { %v1094_v63 = vadd.f32 %v2785_v62, %v1093_v57  ;;  %v2126_v54 = vpop.f32.mrb[7].mxu0 }
 0x83a   :  { %1097 = vst.msk [vmem:[#allocation5] sm:$0xff] %vm54_vm0, %v1094_v63 }
 0x83b   :  { %v1421_v0 = vpop.f32.mrb[8].mxu0 }
 0x83c   :  { %v1425_v1 = vmul.f32 0.35355338, %v1421_v0  ;;  %v2141_v5 = vpop.f32.mrb[9].mxu0 }
 0x83e   :  { %v1426_v6 = vsel %vm2567_vm4, -1e+30, %v1425_v1 }
 0x83f   :  { %v1606_v14 = vpop.f32.mrb[10].mxu0  ;;  %v1427_v20 = vsel %vm245_vm3, %v1426_v6, -inf }
 0x840   :  { %v1610_v9 = vmul.f32 0.35355338, %v1606_v14  ;;  %1428 = vmax.xlane.f32.xlu1 %v1427_v20  ;;  %v2151_v58 = vpop.f32.mrb[11].mxu0 }
 0x842   :  { %v1611_v17 = vsel %vm2567_vm4, -1e+30, %v1610_v9 }
 0x843   :  { %v1791_v3 = vpop.f32.mrb[12].mxu0  ;;  %v1612_v25 = vsel %vm245_vm3, %v1611_v17, -inf }
 0x844   :  { %v1795_v60 = vmul.f32 0.35355338, %v1791_v3  ;;  %v2161_v28 = vpop.f32.mrb[13].mxu0  ;;  %1613 = vmax.xlane.f32.xlu0 %v1612_v25  ;;  %1248 = vadd.xlane.f32.xlu1 %v1247_v26 }
 0x846   :  { %v1796_v29 = vsel %vm2567_vm4, -1e+30, %v1795_v60 }
 0x847   :  { %v1797_v30 = vsel %vm245_vm3, %v1796_v29, -inf }
 0x848   :  { %1798 = vmax.xlane.f32.xlu0 %v1797_v30 }
 0x8cd   :  { %v1429_v31 = vpop.xlane.xlu1 %1428 }
 0x8ce   :  { %v1430_v4 = vsub.f32 %v1426_v6, %v1429_v31 }
 0x8d0   :  { %v1431_v33 = vmul.f32 1.442695, %v1430_v4 }
 0x8d1   :  { %v1614_v34 = vpop.xlane.xlu0 %1613  ;;  %v1249_v47 = vpop.xlane.xlu1 %1248 }
 0x8d2   :  { %2245 = vpow2.f32 %v1431_v33  ;;  %v1615_v8 = vsub.f32 %v1611_v17, %v1614_v34 }
 0x8d4   :  { %v1616_v35 = vmul.f32 1.442695, %v1615_v8 }
 0x8d5   :  { %v1799_v37 = vpop.xlane.xlu0 %1798 }
 0x8d6   :  { %2247 = vpow2.f32 %v1616_v35  ;;  %v1800_v15 = vsub.f32 %v1796_v29, %v1799_v37 }
 0x8d8   :  { %v1801_v16 = vmul.f32 1.442695, %v1800_v15 }
 0x8da   :  { %2249 = vpow2.f32 %v1801_v16 }
 0x8db   :  { %2251 = vrcp.f32 %v1249_v47 }
 0x8dc   :  { %v2246_v19 = vpop.eup %2245 }
 0x8dd   :  { %v1433_v44 = vsel %vm245_vm3, %v2246_v19, 0.0 }
 0x8de   :  { %1434 = vadd.xlane.f32.xlu0 %v1433_v44 }
 0x8e0   :  { %v2248_v27 = vpop.eup %2247 }
 0x8e1   :  { %v1618_v43 = vsel %vm245_vm3, %v2248_v27, 0.0 }
 0x8e2   :  { %1619 = vadd.xlane.f32.xlu1 %v1618_v43 }
 0x8e4   :  { %v2250_v36 = vpop.eup %2249 }
 0x8e5   :  { %v1803_v59 = vsel %vm245_vm3, %v2250_v36, 0.0  ;;  %v2252_v39 = vpop.eup %2251 }
 0x8e6   :  { %1804 = vadd.xlane.f32.xlu0 %v1803_v59  ;;  %v1251_v49 = vmul.f32 %v2252_v39, %v2244_v24 }
 0x8f3   :  { %1253 = vrot.lane.b32.xlu1 %v2432_v13, %s2325_s19 }
 0x8fc   :  { %1623 = vrot.lane.b32.xlu0 %v2432_v13, %s2333_s26 }
 0x96b   :  { %v1435_v38 = vpop.xlane.xlu0 %1434 }
 0x96c   :  { %2253 = vrcp.f32 %v1435_v38 }
 0x96f   :  { %v1620_v2 = vpop.xlane.xlu1 %1619 }
 0x970   :  { %2255 = vrcp.f32 %v1620_v2 }
 0x973   :  { %v1254_v40 = vpop.permute.xlu1 %1253  ;;  %v1805_v11 = vpop.xlane.xlu0 %1804 }
 0x974   :  { %2257 = vrcp.f32 %v1805_v11  ;;  %2133 = vmatpush3.msra.mxu1 %v1254_v40 }
 0x975   :  { %2135 = vmatmul.mubr.msk.f32.vlgmr.msra.gmra.mrb[14].mxu1 %vm245_vm3, %v1251_v49  ;;  %2142 = vmatprep.subr.mxu1 %v2314_v21 }
 0x976   :  { %v2254_v12 = vpop.eup %2253  ;;  %2143 = vmatpush3.msra.mxu1 %v1254_v40  ;;  %2144 = vmatprep.mubr.msk.f32.mxu1 %vm2315_vm1, %v2314_v21 }
 0x977   :  { %v1437_v13 = vmul.f32 %v2254_v12, %v2246_v19  ;;  %v1624_v52 = vpop.permute.xlu0 %1623  ;;  %2152 = vmatprep.subr.mxu1 %v2314_v21 }
 0x979   :  { %2145 = vmatmul.mubr.msk.f32.vlgmr.msra.gmra.mrb[16].mxu1 %vm245_vm3, %v1437_v13 }
 0x97a   :  { %v2256_v18 = vpop.eup %2255  ;;  %2153 = vmatpush3.msra.mxu1 %v1624_v52  ;;  %2154 = vmatprep.mubr.msk.f32.mxu1 %vm2315_vm1, %v2314_v21 }
 0x97b   :  { %v1622_v22 = vmul.f32 %v2256_v18, %v2248_v27  ;;  %2162 = vmatprep.subr.mxu1 %v2314_v21 }
 0x97d   :  { %2155 = vmatmul.mubr.msk.f32.vlgmr.msra.gmra.mrb[18].mxu1 %vm245_vm3, %v1622_v22 }
 0x97e   :  { %v2258_v41 = vpop.eup %2257  ;;  %2163 = vmatpush3.msra.mxu1 %v1624_v52  ;;  %2164 = vmatprep.mubr.msk.f32.mxu1 %vm2315_vm1, %v2314_v21 }
 0x97f   :  { %v1807_v45 = vmul.f32 %v2258_v41, %v2250_v36 }
 0x981   :  { %2165 = vmatmul.mubr.msk.f32.vlgmr.msra.gmra.mrb[20].mxu1 %vm245_vm3, %v1807_v45 }
 0xa48   :  { %v1325_v42 = vpop.f32.mrb[14].mxu1 }
 0xa49   :  { %v2136_v48 = vpop.f32.mrb[15].mxu1 }
 0xa4c   :  { %v1507_v50 = vpop.f32.mrb[16].mxu1 }
 0xa4d   :  { %1882 = vrot.lane.b32.xlu1 %v1507_v50, %s2309_s12  ;;  %v2146_v10 = vpop.f32.mrb[17].mxu1 }
 0xa50   :  { %v1695_v23 = vpop.f32.mrb[18].mxu1 }
 0xa51   :  { %1886 = vrot.lane.b32.xlu1 %v1695_v23, %s2323_s17  ;;  %v2156_v53 = vpop.f32.mrb[19].mxu1 }
 0xa54   :  { %v1877_v55 = vpop.f32.mrb[20].mxu1 }
 0xa55   :  { %1890 = vrot.lane.b32.xlu0 %v1877_v55, %s2324_s18  ;;  %v2166_v7 = vpop.f32.mrb[21].mxu1 }
 0xabf   :  { %v1883_v46 = vpop.permute.xlu1 %1882 }
 0xac0   :  { %v1893_v21 = vsel %vm245_vm3, %v1325_v42, %v1883_v46 }
 0xac3   :  { %v1887_v32 = vpop.permute.xlu1 %1886 }
 0xac4   :  { %v1894_v56 = vsel %vm1014_vm5, %v1893_v21, %v1887_v32 }
 0xac7   :  { %v1891_v61 = vpop.permute.xlu0 %1890 }
 0xac8   :  { %v1895_v51 = vsel %vm1016_vm6, %v1894_v56, %v1891_v61 }
 0xac9   :  { %2176 = vmatmul.mubr.msk.f32.vlgmr.msra.gmra.mrb[14].mxu0 %vm54_vm0, %v1895_v51 }
 0xb9c   :  { %v1965_v57 = vpop.f32.mrb[14].mxu0 }
 0xb9d   :  { %v1966_v63 = vadd.f32 %v2785_v62, %v1965_v57  ;;  %v2177_v54 = vpop.f32.mrb[15].mxu0 }
 0xb9f   :  { %1969 = vst.msk [vmem:[#allocation5 + $0x8] sm:$0xff] %vm54_vm0, %v1966_v63 }
 0xba0   :  { %2292 = shalt.err (!%p2289_p12)
}
 0xba1   :  { %s2293_s5 = scalar_lea.hbm %s2850_s7, 256 }
 0xba2   :  { %p2294_p13 = scmp.ne.s32.totalorder %s2850_s7, %s2293_s5  ;;  %p2297_p0 = scmp.lt.u32.totalorder %s2293_s5, %s2850_s7 }
 0xba4   :  { %p2299_p1 = pnand %p2297_p0, %p2294_p13 }
 0xba6   :  { %2302 = shalt.err (!%p2299_p1)
}
 0xba7   :  { %1981 = dma.vmem_to_hbm [thread:$0]  %s1976_s1, 256, %s2850_s7, [#allocation4], %s2308_s11, %s2308_s11, %s2309_s12  }
 0xba8   :  { %2305 = dma.done.wait [#allocation4], 256  }
 0xba9   :  { %2306 = vsyncadd [#allocation4], 4294967040 }
 0xbaa   :  { %1985 = vsyncpa [#allocation3], 1 }
 0xbab   :  { %1986 = vsyncpa [#allocation4], 1 }

</bundles_post_ra>
